<compile_context>
chip_gen: v6e
topology: v6e:2x2x1
jax: 0.10.0
libtpu: 0.0.40
codegen_flags: <defaults>
</compile_context>

<pallas_src>
import functools
import math

import jax
import jax.numpy as jnp
from jax.experimental import pallas as pl
from jax.experimental.pallas import tpu as pltpu

_BN_EPS = 1e-5
_VMEM_LIMIT = 32 * 1024 * 1024   # budget against v7x's smaller scoped VMEM


def _round_up(x, m):
    return (x + m - 1) // m * m


# ----------------------------- Pallas kernels ------------------------------ #

def _conv_relu_stats_kernel(p_ref, w_ref, b_ref, y_ref, stats_ref, *, m_real):
    """One row tile of y = relu(patches @ W + b) plus partial BN statistics.

    p_ref:     (TILE_M, K)    bf16 im2col patches (rows are (n, ho, wo))
    w_ref:     (K, Cout)      bf16
    b_ref:     (1, Cout)      f32
    y_ref:     (TILE_M, Cout) f32 conv+relu output tile
    stats_ref: (1, 2, Cout)   f32 per-tile [sum; sum_sq] over valid rows
    """
    i = pl.program_id(0)
    tile_m = p_ref.shape[0]

    y = jnp.dot(p_ref[...], w_ref[...], preferred_element_type=jnp.float32)
    y = jnp.maximum(y + b_ref[...], 0.0)
    y_ref[...] = y

    # Exclude rows that are only M-padding from the batch statistics.
    row = i * tile_m + jax.lax.broadcasted_iota(jnp.int32, (tile_m, 1), 0)
    yv = y * (row < m_real).astype(jnp.float32)
    s1 = jnp.sum(yv, axis=0, keepdims=True)
    s2 = jnp.sum(yv * yv, axis=0, keepdims=True)
    stats_ref[...] = jnp.concatenate([s1, s2], axis=0)[None]


def _bn_apply_kernel(y_ref, stats_ref, affine_ref, o_ref, *, inv_m):
    """Training-mode BatchNorm with pre-reduced batch stats; cast to o_ref dtype."""
    mean = stats_ref[0:1, :] * inv_m
    var = stats_ref[1:2, :] * inv_m - mean * mean          # biased variance
    scale = affine_ref[0:1, :] * jax.lax.rsqrt(var + _BN_EPS)
    shift = affine_ref[1:2, :] - mean * scale
    o_ref[...] = (y_ref[...] * scale + shift).astype(o_ref.dtype)


def _bn_pool_mlp_kernel(y_ref, stats_ref, affine_ref, w1_ref, b1_ref,
                        w2_ref, b2_ref, o_ref, pooled_ref, *, s_real, inv_m):
    """Fused BN2 + AdaptiveMaxPool2d(1) + fc1 + ReLU + fc2 + sigmoid.

    y_ref:      (N, TILE_S, C) f32 conv2+relu output, spatial-tiled
    o_ref:      (N, 128)       f32 lane-dense sigmoid output (col 0 = logit)
    pooled_ref: (N, C)         f32 running-max scratch (persists across grid)
    """
    i = pl.program_id(0)

    @pl.when(i == 0)
    def _():
        pooled_ref[...] = jnp.full(pooled_ref.shape, -jnp.inf, pooled_ref.dtype)

    mean = stats_ref[0:1, :] * inv_m
    var = stats_ref[1:2, :] * inv_m - mean * mean
    scale = affine_ref[0:1, :] * jax.lax.rsqrt(var + _BN_EPS)
    shift = affine_ref[1:2, :] - mean * scale

    tile_s = y_ref.shape[1]
    bn = y_ref[...] * scale[None] + shift[None]            # (N, TILE_S, C)
    s_idx = i * tile_s + jax.lax.broadcasted_iota(jnp.int32, (1, tile_s, 1), 1)
    bn = jnp.where(s_idx < s_real, bn, -jnp.inf)           # mask spatial padding
    pooled_ref[...] = jnp.maximum(pooled_ref[...], jnp.max(bn, axis=1))

    @pl.when(i == pl.num_programs(0) - 1)
    def _():
        pooled = pooled_ref[...]
        h = jnp.dot(pooled.astype(jnp.bfloat16), w1_ref[...],
                    preferred_element_type=jnp.float32) + b1_ref[...]
        h = jnp.maximum(h, 0.0)
        z = jnp.dot(h.astype(jnp.bfloat16), w2_ref[...],
                    preferred_element_type=jnp.float32) + b2_ref[...]
        o_ref[...] = jax.nn.sigmoid(z)


# --------------------------- pallas_call wrappers --------------------------- #

def _conv_relu_stats(patches, w_mat, bias, m_real, tile_m):
    m_pad, k = patches.shape
    cout = w_mat.shape[1]
    n_tiles = m_pad // tile_m
    y, part = pl.pallas_call(
        functools.partial(_conv_relu_stats_kernel, m_real=m_real),
        out_shape=(jax.ShapeDtypeStruct((m_pad, cout), jnp.float32),
                   jax.ShapeDtypeStruct((n_tiles, 2, cout), jnp.float32)),
        grid_spec=pltpu.PrefetchScalarGridSpec(
            num_scalar_prefetch=0,
            grid=(n_tiles,),
            in_specs=[pl.BlockSpec((tile_m, k), lambda i: (i, 0)),
                      pl.BlockSpec((k, cout), lambda i: (0, 0)),
                      pl.BlockSpec((1, cout), lambda i: (0, 0))],
            out_specs=[pl.BlockSpec((tile_m, cout), lambda i: (i, 0)),
                       pl.BlockSpec((1, 2, cout), lambda i: (i, 0, 0))]),
        compiler_params=pltpu.CompilerParams(
            dimension_semantics=("parallel",),
            vmem_limit_bytes=_VMEM_LIMIT),
    )(patches, w_mat, bias)
    # Tiny cross-tile reduction -> exact whole-batch statistics.
    return y, jnp.sum(part, axis=0)


def _bn_apply(y, stats, affine, m_real, tile_m, out_dtype):
    m_pad, c = y.shape
    n_tiles = m_pad // tile_m
    return pl.pallas_call(
        functools.partial(_bn_apply_kernel, inv_m=1.0 / float(m_real)),
        out_shape=jax.ShapeDtypeStruct((m_pad, c), out_dtype),
        grid_spec=pltpu.PrefetchScalarGridSpec(
            num_scalar_prefetch=0,
            grid=(n_tiles,),
            in_specs=[pl.BlockSpec((tile_m, c), lambda i: (i, 0)),
                      pl.BlockSpec((2, c), lambda i: (0, 0)),
                      pl.BlockSpec((2, c), lambda i: (0, 0))],
            out_specs=pl.BlockSpec((tile_m, c), lambda i: (i, 0))),
        compiler_params=pltpu.CompilerParams(
            dimension_semantics=("parallel",),
            vmem_limit_bytes=_VMEM_LIMIT),
    )(y, stats, affine)


def _bn_pool_mlp(y_nsc, stats, affine, w1, b1, w2, b2, s_real, m_real, tile_s):
    n, s_pad, c = y_nsc.shape
    n_tiles = s_pad // tile_s
    cout = w2.shape[1]
    return pl.pallas_call(
        functools.partial(_bn_pool_mlp_kernel,
                          s_real=s_real, inv_m=1.0 / float(m_real)),
        out_shape=jax.ShapeDtypeStruct((n, cout), jnp.float32),
        grid_spec=pltpu.PrefetchScalarGridSpec(
            num_scalar_prefetch=0,
            grid=(n_tiles,),
            in_specs=[pl.BlockSpec((n, tile_s, c), lambda i: (0, i, 0)),
                      pl.BlockSpec((2, c), lambda i: (0, 0)),
                      pl.BlockSpec((2, c), lambda i: (0, 0)),
                      pl.BlockSpec(w1.shape, lambda i: (0, 0)),
                      pl.BlockSpec(b1.shape, lambda i: (0, 0)),
                      pl.BlockSpec(w2.shape, lambda i: (0, 0)),
                      pl.BlockSpec(b2.shape, lambda i: (0, 0))],
            out_specs=pl.BlockSpec((n, cout), lambda i: (0, 0)),
            scratch_shapes=[pltpu.VMEM((n, c), jnp.float32)]),
        compiler_params=pltpu.CompilerParams(
            dimension_semantics=("arbitrary",),
            vmem_limit_bytes=_VMEM_LIMIT),
    )(y_nsc, stats, affine, w1, b1, w2, b2)


# ------------------------------ JAX glue ----------------------------------- #

def _im2col(x_nhwc, kh, kw, stride, pad):
    """Conv patches: returns (N*Ho*Wo, kh*kw*Cin) in n-major row order."""
    n, h, w, c = x_nhwc.shape
    xp = jnp.pad(x_nhwc, ((0, 0), (pad, pad), (pad, pad), (0, 0)))
    ho = (h + 2 * pad - kh) // stride + 1
    wo = (w + 2 * pad - kw) // stride + 1
    patches = []
    for i in range(kh):
        for j in range(kw):
            patches.append(
                xp[:, i:i + stride * (ho - 1) + 1:stride,
                      j:j + stride * (wo - 1) + 1:stride, :])
    p = jnp.stack(patches, axis=3)          # (N, Ho, Wo, KH*KW, Cin)
    return p.reshape(n * ho * wo, kh * kw * c), ho, wo


def _conv_weight_to_mat(w_oihw):
    """(Cout, Cin, KH, KW) -> (KH*KW*Cin, Cout), matching im2col column order."""
    return jnp.transpose(w_oihw, (2, 3, 1, 0)).reshape(-1, w_oihw.shape[0])


def init_params(key):
    """Deterministic synthetic parameters, shapes match the PyTorch module."""
    k = jax.random.split(key, 6)
    conv1_w = jax.random.normal(k[0], (16, 1, 3, 3), jnp.float32) * math.sqrt(2.0 / (16 * 3 * 3))
    conv1_b = jnp.zeros((16,), jnp.float32)
    conv2_w = jax.random.normal(k[1], (64, 16, 3, 3), jnp.float32) * math.sqrt(2.0 / (64 * 3 * 3))
    conv2_b = jnp.zeros((64,), jnp.float32)
    bn1_gamma, bn1_beta = jnp.ones((16,), jnp.float32), jnp.zeros((16,), jnp.float32)
    bn2_gamma, bn2_beta = jnp.ones((64,), jnp.float32), jnp.zeros((64,), jnp.float32)
    b1 = 1.0 / math.sqrt(64.0)
    fc1_w = jax.random.uniform(k[2], (32, 64), jnp.float32, -b1, b1)
    fc1_b = jax.random.uniform(k[3], (32,), jnp.float32, -b1, b1)
    b2 = 1.0 / math.sqrt(32.0)
    fc2_w = jax.random.uniform(k[4], (1, 32), jnp.float32, -b2, b2)
    fc2_b = jax.random.uniform(k[5], (1,), jnp.float32, -b2, b2)
    return dict(conv1_w=conv1_w, conv1_b=conv1_b, conv2_w=conv2_w, conv2_b=conv2_b,
                bn1_gamma=bn1_gamma, bn1_beta=bn1_beta,
                bn2_gamma=bn2_gamma, bn2_beta=bn2_beta,
                fc1_w=fc1_w, fc1_b=fc1_b, fc2_w=fc2_w, fc2_b=fc2_b)


def prepare_params(params, k1_pad=16, head_pad=128):
    """One-time param preprocessing (transposes, bf16 casts, padding, packing)."""
    w1m = _conv_weight_to_mat(params["conv1_w"])                    # (9, 16)
    w1m = jnp.pad(w1m, ((0, k1_pad - w1m.shape[0]), (0, 0))).astype(jnp.bfloat16)
    w2m = _conv_weight_to_mat(params["conv2_w"]).astype(jnp.bfloat16)  # (144, 64)
    fc2_w = params["fc2_w"].T                                       # (32, 1)
    fc2_wp = jnp.pad(fc2_w, ((0, 0), (0, head_pad - fc2_w.shape[1]))).astype(jnp.bfloat16)
    fc2_bp = jnp.pad(params["fc2_b"], (0, head_pad - 1)).reshape(1, head_pad)
    return dict(
        conv1_w=w1m, conv1_b=params["conv1_b"].reshape(1, -1),
        conv2_w=w2m, conv2_b=params["conv2_b"].reshape(1, -1),
        bn1_affine=jnp.stack([params["bn1_gamma"], params["bn1_beta"]], axis=0),
        bn2_affine=jnp.stack([params["bn2_gamma"], params["bn2_beta"]], axis=0),
        fc1_w=params["fc1_w"].T.astype(jnp.bfloat16),               # (64, 32)
        fc1_b=params["fc1_b"].reshape(1, -1),
        fc2_w=fc2_wp, fc2_b=fc2_bp)


def audio_classifier_forward(x_nchw, prep, *, tile_m=512, tile_s=128):
    assert tile_m % 16 == 0 and tile_s % 8 == 0
    n = x_nchw.shape[0]
    x = jnp.transpose(x_nchw, (0, 2, 3, 1)).astype(jnp.float32)     # NCHW -> NHWC

    # --- conv1 + relu (row-tiled matmul) with per-tile BN partial stats ---
    p1, h1, w1 = _im2col(x, 3, 3, stride=2, pad=2)
    m1 = p1.shape[0]
    k1_pad = prep["conv1_w"].shape[0]
    tm1 = min(tile_m, _round_up(m1, 16))
    m1_pad = _round_up(m1, tm1)
    p1 = jnp.pad(p1, ((0, m1_pad - m1), (0, k1_pad - p1.shape[1]))).astype(jnp.bfloat16)
    y1, stats1 = _conv_relu_stats(p1, prep["conv1_w"], prep["conv1_b"], m1, tm1)

    # --- bn1 apply (tiled elementwise), emits bf16 for conv2's MXU inputs ---
    y1 = _bn_apply(y1, stats1, prep["bn1_affine"], m1, tm1, jnp.bfloat16)
    y1 = y1[:m1].reshape(n, h1, w1, 16)

    # --- conv2 + relu with per-tile BN partial stats ---
    p2, h2, w2 = _im2col(y1, 3, 3, stride=2, pad=1)                 # bf16 patches
    m2 = p2.shape[0]
    tm2 = min(tile_m, _round_up(m2, 16))
    m2_pad = _round_up(m2, tm2)
    p2 = jnp.pad(p2, ((0, m2_pad - m2), (0, 0)))
    y2, stats2 = _conv_relu_stats(p2, prep["conv2_w"], prep["conv2_b"], m2, tm2)

    # --- fused bn2 + global max pool + fc1 + relu + fc2 + sigmoid ---
    s2 = h2 * w2
    ts = min(tile_s, _round_up(s2, 8))
    s2_pad = _round_up(s2, ts)
    y2 = y2[:m2].reshape(n, s2, 64)
    y2 = jnp.pad(y2, ((0, 0), (0, s2_pad - s2), (0, 0)))
    out = _bn_pool_mlp(y2, stats2, prep["bn2_affine"],
                       prep["fc1_w"], prep["fc1_b"], prep["fc2_w"], prep["fc2_b"],
                       s2, m2, ts)                                  # (N, 128) lane-dense
    return out[:, :1]                                               # (N, 1)


# --------------------------- pure-JAX reference ----------------------------- #

def _ref_forward(x_nchw, params):
    """f32 reference, identical semantics to the PyTorch module in train mode."""
    def conv(x, w, b, stride, pad):
        y = jax.lax.conv_general_dilated(
            x, w, (stride, stride), [(pad, pad), (pad, pad)],
            dimension_numbers=("NCHW", "OIHW", "NCHW"))
        return y + b[None, :, None, None]

    def bn(x, gamma, beta):
        mean = jnp.mean(x, axis=(0, 2, 3), keepdims=True)
        var = jnp.mean((x - mean) ** 2, axis=(0, 2, 3), keepdims=True)
        return ((x - mean) * jax.lax.rsqrt(var + _BN_EPS)
                * gamma[None, :, None, None] + beta[None, :, None, None])

    x = x_nchw.astype(jnp.float32)
    y = bn(jax.nn.relu(conv(x, params["conv1_w"], params["conv1_b"], 2, 2)),
           params["bn1_gamma"], params["bn1_beta"])
    y = bn(jax.nn.relu(conv(y, params["conv2_w"], params["conv2_b"], 2, 1)),
           params["bn2_gamma"], params["bn2_beta"])
    p = jnp.max(y, axis=(2, 3))                                     # (N, 64)
    h = jax.nn.relu(p @ params["fc1_w"].T + params["fc1_b"])
    z = h @ params["fc2_w"].T + params["fc2_b"]
    return jax.nn.sigmoid(z)


if __name__ == "__main__":
    key = jax.random.PRNGKey(0)
    kx, kp = jax.random.split(key)
    x = jax.random.normal(kx, (2, 1, 16, 16), jnp.float32)          # (N, C=1, H, W)
    params = init_params(kp)
    prep = prepare_params(params)

    # Small tiles so the demo exercises multi-tile grids, partial-tile masking
    # and the cross-tile BN / running-max accumulation paths.
    fwd = jax.jit(functools.partial(audio_classifier_forward, tile_m=64, tile_s=8))
    out = fwd(x, prep)
    jax.block_until_ready(out)

    assert out.shape == (2, 1) and out.dtype == jnp.float32
    assert bool(jnp.all((out >= 0.0) & (out <= 1.0)))
    ref = _ref_forward(x, params)
    max_err = float(jnp.max(jnp.abs(out - ref)))
    assert max_err < 5e-2, f"mismatch vs reference: max abs err {max_err}"
    print("KERNEL_OK")
</pallas_src>

<mosaic_0001>
module attributes {stable_mosaic.version = 11 : i64} {
  func.func @_conv_relu_stats_kernel(%arg0: i32, %arg1: memref<64x16xbf16, #tpu.memory_space<vmem>>, %arg2: memref<16x16xbf16, #tpu.memory_space<vmem>>, %arg3: memref<1x16xf32, #tpu.memory_space<vmem>>, %arg4: memref<64x16xf32, #tpu.memory_space<vmem>>, %arg5: memref<1x2x16xf32, #tpu.memory_space<vmem>>) attributes {dimension_semantics = [#tpu.dimension_semantics<parallel>], iteration_bounds = array<i64: 3>, scalar_prefetch = 0 : i64, scratch_operands = 0 : i64, tpu.core_type = #tpu.core_type<tc>, window_params = [{transform_indices = @transform_0, window_bounds = array<i64: 64, 16>}, {pipeline_mode = #tpu.pipeline_mode<synchronous>, transform_indices = @transform_1, window_bounds = array<i64: 16, 16>}, {pipeline_mode = #tpu.pipeline_mode<synchronous>, transform_indices = @transform_2, window_bounds = array<i64: 1, 16>}, {transform_indices = @transform_3, window_bounds = array<i64: 64, 16>}, {transform_indices = @transform_4, window_bounds = array<i64: 1, 2, 16>}]} {
    %c0 = arith.constant 0 : index
    %c0_0 = arith.constant 0 : index
    %0 = vector.load %arg1[%c0, %c0_0] : memref<64x16xbf16, #tpu.memory_space<vmem>>, vector<64x16xbf16>
    %c0_1 = arith.constant 0 : index
    %c0_2 = arith.constant 0 : index
    %1 = vector.load %arg2[%c0_1, %c0_2] : memref<16x16xbf16, #tpu.memory_space<vmem>>, vector<16x16xbf16>
    %cst = arith.constant dense<0.000000e+00> : vector<64x16xf32>
    %2 = tpu.matmul %0, %1, %cst {dimension_numbers = #tpu.dot_dimension_numbers<[1], [0], [0], [1], [0, 0, 1, 1], [], []>} : vector<64x16xbf16>, vector<16x16xbf16>, vector<64x16xf32> -> vector<64x16xf32>
    %c0_3 = arith.constant 0 : index
    %c0_4 = arith.constant 0 : index
    %3 = vector.load %arg3[%c0_3, %c0_4] : memref<1x16xf32, #tpu.memory_space<vmem>>, vector<1x16xf32>
    %4 = vector.broadcast %3 : vector<1x16xf32> to vector<64x16xf32>
    %5 = arith.addf %2, %4 : vector<64x16xf32>
    %cst_5 = arith.constant 0.000000e+00 : f32
    %6 = vector.broadcast %cst_5 : f32 to vector<64x16xf32>
    %7 = arith.maximumf %5, %6 : vector<64x16xf32>
    %c0_6 = arith.constant 0 : index
    %c0_7 = arith.constant 0 : index
    %8 = vector.load %arg4[%c0_6, %c0_7] : memref<64x16xf32, #tpu.memory_space<vmem>>, vector<64x16xf32>
    tpu.vector_store %arg4[%c0_6, %c0_7], %7 {strides = array<i32>} : memref<64x16xf32, #tpu.memory_space<vmem>>, vector<64x16xf32>,
    %c64_i32 = arith.constant 64 : i32
    %9 = arith.muli %arg0, %c64_i32 : i32
    %10 = tpu.iota {dimensions = array<i32: 0>} : vector<64x1xi32>
    %11 = vector.broadcast %9 : i32 to vector<64x1xi32>
    %12 = arith.addi %11, %10 : vector<64x1xi32>
    %c162_i32 = arith.constant 162 : i32
    %13 = vector.broadcast %c162_i32 : i32 to vector<64x1xi32>
    %14 = arith.cmpi slt, %12, %13 : vector<64x1xi32>
    %15 = arith.extui %14 : vector<64x1xi1> to vector<64x1xi32>
    %16 = arith.sitofp %15 : vector<64x1xi32> to vector<64x1xf32>
    %17 = vector.broadcast %16 : vector<64x1xf32> to vector<64x16xf32>
    %18 = arith.mulf %7, %17 : vector<64x16xf32>
    %cst_8 = arith.constant dense<0.000000e+00> : vector<16xf32>
    %19 = vector.multi_reduction <add>, %18, %cst_8 [0] : vector<64x16xf32> to vector<16xf32>
    %20 = vector.shape_cast %19 : vector<16xf32> to vector<1x16xf32>
    %21 = arith.mulf %18, %18 : vector<64x16xf32>
    %cst_9 = arith.constant dense<0.000000e+00> : vector<16xf32>
    %22 = vector.multi_reduction <add>, %21, %cst_9 [0] : vector<64x16xf32> to vector<16xf32>
    %23 = vector.shape_cast %22 : vector<16xf32> to vector<1x16xf32>
    %24 = tpu.concatenate %20, %23 in 0 : vector<1x16xf32>, vector<1x16xf32> -> vector<2x16xf32>
    %25 = vector.shape_cast %24 : vector<2x16xf32> to vector<1x2x16xf32>
    %c0_10 = arith.constant 0 : index
    %c0_11 = arith.constant 0 : index
    %c0_12 = arith.constant 0 : index
    %26 = vector.load %arg5[%c0_10, %c0_11, %c0_12] : memref<1x2x16xf32, #tpu.memory_space<vmem>>, vector<1x2x16xf32>
    tpu.vector_store %arg5[%c0_10, %c0_11, %c0_12], %25 {strides = array<i32>} : memref<1x2x16xf32, #tpu.memory_space<vmem>>, vector<1x2x16xf32>,
    return
  }
  func.func @transform_0(%arg0: i32) -> (i32, i32) {
    %c0_i32 = arith.constant 0 : i32
    %c0_i32_0 = arith.constant 0 : i32
    return %arg0, %c0_i32 : i32, i32
  }
  func.func @transform_1(%arg0: i32) -> (i32, i32) {
    %c0_i32 = arith.constant 0 : i32
    %c0_i32_0 = arith.constant 0 : i32
    %c0_i32_1 = arith.constant 0 : i32
    return %c0_i32, %c0_i32_0 : i32, i32
  }
  func.func @transform_2(%arg0: i32) -> (i32, i32) {
    %c0_i32 = arith.constant 0 : i32
    %c0_i32_0 = arith.constant 0 : i32
    %c0_i32_1 = arith.constant 0 : i32
    return %c0_i32, %c0_i32_0 : i32, i32
  }
  func.func @transform_3(%arg0: i32) -> (i32, i32) {
    %c0_i32 = arith.constant 0 : i32
    %c0_i32_0 = arith.constant 0 : i32
    return %arg0, %c0_i32 : i32, i32
  }
  func.func @transform_4(%arg0: i32) -> (i32, i32, i32) {
    %c0_i32 = arith.constant 0 : i32
    %c0_i32_0 = arith.constant 0 : i32
    %c0_i32_1 = arith.constant 0 : i32
    return %arg0, %c0_i32, %c0_i32_0 : i32, i32, i32
  }
}

module attributes {stable_mosaic.version = 11 : i64} {
  func.func @_bn_apply_kernel(%arg0: i32, %arg1: memref<64x16xf32, #tpu.memory_space<vmem>>, %arg2: memref<2x16xf32, #tpu.memory_space<vmem>>, %arg3: memref<2x16xf32, #tpu.memory_space<vmem>>, %arg4: memref<64x16xbf16, #tpu.memory_space<vmem>>) attributes {dimension_semantics = [#tpu.dimension_semantics<parallel>], iteration_bounds = array<i64: 3>, scalar_prefetch = 0 : i64, scratch_operands = 0 : i64, tpu.core_type = #tpu.core_type<tc>, window_params = [{transform_indices = @transform_0, window_bounds = array<i64: 64, 16>}, {pipeline_mode = #tpu.pipeline_mode<synchronous>, transform_indices = @transform_1, window_bounds = array<i64: 2, 16>}, {pipeline_mode = #tpu.pipeline_mode<synchronous>, transform_indices = @transform_2, window_bounds = array<i64: 2, 16>}, {transform_indices = @transform_3, window_bounds = array<i64: 64, 16>}]} {
    %c0 = arith.constant 0 : index
    %c0_0 = arith.constant 0 : index
    %0 = vector.load %arg2[%c0, %c0_0] : memref<2x16xf32, #tpu.memory_space<vmem>>, vector<1x16xf32>
    %cst = arith.constant 0.00617283955 : f32
    %1 = vector.broadcast %cst : f32 to vector<1x16xf32>
    %2 = arith.mulf %0, %1 : vector<1x16xf32>
    %c1 = arith.constant 1 : index
    %c0_1 = arith.constant 0 : index
    %3 = vector.load %arg2[%c1, %c0_1] : memref<2x16xf32, #tpu.memory_space<vmem>>, vector<1x16xf32>
    %cst_2 = arith.constant 0.00617283955 : f32
    %4 = vector.broadcast %cst_2 : f32 to vector<1x16xf32>
    %5 = arith.mulf %3, %4 : vector<1x16xf32>
    %6 = arith.mulf %2, %2 : vector<1x16xf32>
    %7 = arith.subf %5, %6 : vector<1x16xf32>
    %c0_3 = arith.constant 0 : index
    %c0_4 = arith.constant 0 : index
    %8 = vector.load %arg3[%c0_3, %c0_4] : memref<2x16xf32, #tpu.memory_space<vmem>>, vector<1x16xf32>
    %cst_5 = arith.constant 9.99999974E-6 : f32
    %9 = vector.broadcast %cst_5 : f32 to vector<1x16xf32>
    %10 = arith.addf %7, %9 : vector<1x16xf32>
    %11 = math.rsqrt %10 : vector<1x16xf32>
    %12 = arith.mulf %8, %11 : vector<1x16xf32>
    %c1_6 = arith.constant 1 : index
    %c0_7 = arith.constant 0 : index
    %13 = vector.load %arg3[%c1_6, %c0_7] : memref<2x16xf32, #tpu.memory_space<vmem>>, vector<1x16xf32>
    %14 = arith.mulf %2, %12 : vector<1x16xf32>
    %15 = arith.subf %13, %14 : vector<1x16xf32>
    %c0_8 = arith.constant 0 : index
    %c0_9 = arith.constant 0 : index
    %16 = vector.load %arg1[%c0_8, %c0_9] : memref<64x16xf32, #tpu.memory_space<vmem>>, vector<64x16xf32>
    %17 = vector.broadcast %12 : vector<1x16xf32> to vector<64x16xf32>
    %18 = arith.mulf %16, %17 : vector<64x16xf32>
    %19 = vector.broadcast %15 : vector<1x16xf32> to vector<64x16xf32>
    %20 = arith.addf %18, %19 : vector<64x16xf32>
    %21 = arith.truncf %20 : vector<64x16xf32> to vector<64x16xbf16>
    %c0_10 = arith.constant 0 : index
    %c0_11 = arith.constant 0 : index
    %22 = vector.load %arg4[%c0_10, %c0_11] : memref<64x16xbf16, #tpu.memory_space<vmem>>, vector<64x16xbf16>
    tpu.vector_store %arg4[%c0_10, %c0_11], %21 {strides = array<i32>} : memref<64x16xbf16, #tpu.memory_space<vmem>>, vector<64x16xbf16>,
    return
  }
  func.func @transform_0(%arg0: i32) -> (i32, i32) {
    %c0_i32 = arith.constant 0 : i32
    %c0_i32_0 = arith.constant 0 : i32
    return %arg0, %c0_i32 : i32, i32
  }
  func.func @transform_1(%arg0: i32) -> (i32, i32) {
    %c0_i32 = arith.constant 0 : i32
    %c0_i32_0 = arith.constant 0 : i32
    %c0_i32_1 = arith.constant 0 : i32
    return %c0_i32, %c0_i32_0 : i32, i32
  }
  func.func @transform_2(%arg0: i32) -> (i32, i32) {
    %c0_i32 = arith.constant 0 : i32
    %c0_i32_0 = arith.constant 0 : i32
    %c0_i32_1 = arith.constant 0 : i32
    return %c0_i32, %c0_i32_0 : i32, i32
  }
  func.func @transform_3(%arg0: i32) -> (i32, i32) {
    %c0_i32 = arith.constant 0 : i32
    %c0_i32_0 = arith.constant 0 : i32
    return %arg0, %c0_i32 : i32, i32
  }
}

module attributes {stable_mosaic.version = 11 : i64} {
  func.func @_conv_relu_stats_kernel(%arg0: i32, %arg1: memref<64x144xbf16, #tpu.memory_space<vmem>>, %arg2: memref<144x64xbf16, #tpu.memory_space<vmem>>, %arg3: memref<1x64xf32, #tpu.memory_space<vmem>>, %arg4: memref<64x64xf32, #tpu.memory_space<vmem>>, %arg5: memref<1x2x64xf32, #tpu.memory_space<vmem>>) attributes {dimension_semantics = [#tpu.dimension_semantics<parallel>], iteration_bounds = array<i64: 1>, scalar_prefetch = 0 : i64, scratch_operands = 0 : i64, tpu.core_type = #tpu.core_type<tc>, window_params = [{transform_indices = @transform_0, window_bounds = array<i64: 64, 144>}, {pipeline_mode = #tpu.pipeline_mode<synchronous>, transform_indices = @transform_1, window_bounds = array<i64: 144, 64>}, {pipeline_mode = #tpu.pipeline_mode<synchronous>, transform_indices = @transform_2, window_bounds = array<i64: 1, 64>}, {transform_indices = @transform_3, window_bounds = array<i64: 64, 64>}, {transform_indices = @transform_4, window_bounds = array<i64: 1, 2, 64>}]} {
    %c0 = arith.constant 0 : index
    %c0_0 = arith.constant 0 : index
    %0 = vector.load %arg1[%c0, %c0_0] : memref<64x144xbf16, #tpu.memory_space<vmem>>, vector<64x144xbf16>
    %c0_1 = arith.constant 0 : index
    %c0_2 = arith.constant 0 : index
    %1 = vector.load %arg2[%c0_1, %c0_2] : memref<144x64xbf16, #tpu.memory_space<vmem>>, vector<144x64xbf16>
    %cst = arith.constant dense<0.000000e+00> : vector<64x64xf32>
    %2 = tpu.matmul %0, %1, %cst {dimension_numbers = #tpu.dot_dimension_numbers<[1], [0], [0], [1], [0, 0, 1, 1], [], []>} : vector<64x144xbf16>, vector<144x64xbf16>, vector<64x64xf32> -> vector<64x64xf32>
    %c0_3 = arith.constant 0 : index
    %c0_4 = arith.constant 0 : index
    %3 = vector.load %arg3[%c0_3, %c0_4] : memref<1x64xf32, #tpu.memory_space<vmem>>, vector<1x64xf32>
    %4 = vector.broadcast %3 : vector<1x64xf32> to vector<64x64xf32>
    %5 = arith.addf %2, %4 : vector<64x64xf32>
    %cst_5 = arith.constant 0.000000e+00 : f32
    %6 = vector.broadcast %cst_5 : f32 to vector<64x64xf32>
    %7 = arith.maximumf %5, %6 : vector<64x64xf32>
    %c0_6 = arith.constant 0 : index
    %c0_7 = arith.constant 0 : index
    %8 = vector.load %arg4[%c0_6, %c0_7] : memref<64x64xf32, #tpu.memory_space<vmem>>, vector<64x64xf32>
    tpu.vector_store %arg4[%c0_6, %c0_7], %7 {strides = array<i32>} : memref<64x64xf32, #tpu.memory_space<vmem>>, vector<64x64xf32>,
    %c64_i32 = arith.constant 64 : i32
    %9 = arith.muli %arg0, %c64_i32 : i32
    %10 = tpu.iota {dimensions = array<i32: 0>} : vector<64x1xi32>
    %11 = vector.broadcast %9 : i32 to vector<64x1xi32>
    %12 = arith.addi %11, %10 : vector<64x1xi32>
    %c50_i32 = arith.constant 50 : i32
    %13 = vector.broadcast %c50_i32 : i32 to vector<64x1xi32>
    %14 = arith.cmpi slt, %12, %13 : vector<64x1xi32>
    %15 = arith.extui %14 : vector<64x1xi1> to vector<64x1xi32>
    %16 = arith.sitofp %15 : vector<64x1xi32> to vector<64x1xf32>
    %17 = vector.broadcast %16 : vector<64x1xf32> to vector<64x64xf32>
    %18 = arith.mulf %7, %17 : vector<64x64xf32>
    %cst_8 = arith.constant dense<0.000000e+00> : vector<64xf32>
    %19 = vector.multi_reduction <add>, %18, %cst_8 [0] : vector<64x64xf32> to vector<64xf32>
    %20 = vector.shape_cast %19 : vector<64xf32> to vector<1x64xf32>
    %21 = arith.mulf %18, %18 : vector<64x64xf32>
    %cst_9 = arith.constant dense<0.000000e+00> : vector<64xf32>
    %22 = vector.multi_reduction <add>, %21, %cst_9 [0] : vector<64x64xf32> to vector<64xf32>
    %23 = vector.shape_cast %22 : vector<64xf32> to vector<1x64xf32>
    %24 = tpu.concatenate %20, %23 in 0 : vector<1x64xf32>, vector<1x64xf32> -> vector<2x64xf32>
    %25 = vector.shape_cast %24 : vector<2x64xf32> to vector<1x2x64xf32>
    %c0_10 = arith.constant 0 : index
    %c0_11 = arith.constant 0 : index
    %c0_12 = arith.constant 0 : index
    %26 = vector.load %arg5[%c0_10, %c0_11, %c0_12] : memref<1x2x64xf32, #tpu.memory_space<vmem>>, vector<1x2x64xf32>
    tpu.vector_store %arg5[%c0_10, %c0_11, %c0_12], %25 {strides = array<i32>} : memref<1x2x64xf32, #tpu.memory_space<vmem>>, vector<1x2x64xf32>,
    return
  }
  func.func @transform_0(%arg0: i32) -> (i32, i32) {
    %c0_i32 = arith.constant 0 : i32
    %c0_i32_0 = arith.constant 0 : i32
    return %arg0, %c0_i32 : i32, i32
  }
  func.func @transform_1(%arg0: i32) -> (i32, i32) {
    %c0_i32 = arith.constant 0 : i32
    %c0_i32_0 = arith.constant 0 : i32
    %c0_i32_1 = arith.constant 0 : i32
    return %c0_i32, %c0_i32_0 : i32, i32
  }
  func.func @transform_2(%arg0: i32) -> (i32, i32) {
    %c0_i32 = arith.constant 0 : i32
    %c0_i32_0 = arith.constant 0 : i32
    %c0_i32_1 = arith.constant 0 : i32
    return %c0_i32, %c0_i32_0 : i32, i32
  }
  func.func @transform_3(%arg0: i32) -> (i32, i32) {
    %c0_i32 = arith.constant 0 : i32
    %c0_i32_0 = arith.constant 0 : i32
    return %arg0, %c0_i32 : i32, i32
  }
  func.func @transform_4(%arg0: i32) -> (i32, i32, i32) {
    %c0_i32 = arith.constant 0 : i32
    %c0_i32_0 = arith.constant 0 : i32
    %c0_i32_1 = arith.constant 0 : i32
    return %arg0, %c0_i32, %c0_i32_0 : i32, i32, i32
  }
}

module attributes {stable_mosaic.version = 11 : i64} {
  func.func @_bn_pool_mlp_kernel(%arg0: i32, %arg1: memref<2x8x64xf32, #tpu.memory_space<vmem>>, %arg2: memref<2x64xf32, #tpu.memory_space<vmem>>, %arg3: memref<2x64xf32, #tpu.memory_space<vmem>>, %arg4: memref<64x32xbf16, #tpu.memory_space<vmem>>, %arg5: memref<1x32xf32, #tpu.memory_space<vmem>>, %arg6: memref<32x128xbf16, #tpu.memory_space<vmem>>, %arg7: memref<1x128xf32, #tpu.memory_space<vmem>>, %arg8: memref<2x128xf32, #tpu.memory_space<vmem>>, %arg9: memref<2x64xf32, #tpu.memory_space<vmem>>) attributes {dimension_semantics = [#tpu.dimension_semantics<arbitrary>], iteration_bounds = array<i64: 4>, scalar_prefetch = 0 : i64, scratch_operands = 1 : i64, tpu.core_type = #tpu.core_type<tc>, window_params = [{transform_indices = @transform_0, window_bounds = array<i64: 2, 8, 64>}, {pipeline_mode = #tpu.pipeline_mode<synchronous>, transform_indices = @transform_1, window_bounds = array<i64: 2, 64>}, {pipeline_mode = #tpu.pipeline_mode<synchronous>, transform_indices = @transform_2, window_bounds = array<i64: 2, 64>}, {pipeline_mode = #tpu.pipeline_mode<synchronous>, transform_indices = @transform_3, window_bounds = array<i64: 64, 32>}, {pipeline_mode = #tpu.pipeline_mode<synchronous>, transform_indices = @transform_4, window_bounds = array<i64: 1, 32>}, {pipeline_mode = #tpu.pipeline_mode<synchronous>, transform_indices = @transform_5, window_bounds = array<i64: 32, 128>}, {pipeline_mode = #tpu.pipeline_mode<synchronous>, transform_indices = @transform_6, window_bounds = array<i64: 1, 128>}, {pipeline_mode = #tpu.pipeline_mode<synchronous>, transform_indices = @transform_7, window_bounds = array<i64: 2, 128>}]} {
    %c0_i32 = arith.constant 0 : i32
    %0 = arith.cmpi eq, %arg0, %c0_i32 : i32
    %1 = arith.extui %0 : i1 to i32
    %c0_i32_0 = arith.constant 0 : i32
    %2 = arith.cmpi ne, %1, %c0_i32_0 : i32
    scf.if %2 {
      %cst_19 = arith.constant 0xFF800000 : f32
      %43 = vector.broadcast %cst_19 : f32 to vector<2x64xf32>
      %c0_20 = arith.constant 0 : index
      %c0_21 = arith.constant 0 : index
      %44 = vector.load %arg9[%c0_20, %c0_21] : memref<2x64xf32, #tpu.memory_space<vmem>>, vector<2x64xf32>
      tpu.vector_store %arg9[%c0_20, %c0_21], %43 {strides = array<i32>} : memref<2x64xf32, #tpu.memory_space<vmem>>, vector<2x64xf32>,
    } else {
    }
    %c0 = arith.constant 0 : index
    %c0_1 = arith.constant 0 : index
    %3 = vector.load %arg2[%c0, %c0_1] : memref<2x64xf32, #tpu.memory_space<vmem>>, vector<1x64xf32>
    %cst = arith.constant 2.000000e-02 : f32
    %4 = vector.broadcast %cst : f32 to vector<1x64xf32>
    %5 = arith.mulf %3, %4 : vector<1x64xf32>
    %c1 = arith.constant 1 : index
    %c0_2 = arith.constant 0 : index
    %6 = vector.load %arg2[%c1, %c0_2] : memref<2x64xf32, #tpu.memory_space<vmem>>, vector<1x64xf32>
    %cst_3 = arith.constant 2.000000e-02 : f32
    %7 = vector.broadcast %cst_3 : f32 to vector<1x64xf32>
    %8 = arith.mulf %6, %7 : vector<1x64xf32>
    %9 = arith.mulf %5, %5 : vector<1x64xf32>
    %10 = arith.subf %8, %9 : vector<1x64xf32>
    %c0_4 = arith.constant 0 : index
    %c0_5 = arith.constant 0 : index
    %11 = vector.load %arg3[%c0_4, %c0_5] : memref<2x64xf32, #tpu.memory_space<vmem>>, vector<1x64xf32>
    %cst_6 = arith.constant 9.99999974E-6 : f32
    %12 = vector.broadcast %cst_6 : f32 to vector<1x64xf32>
    %13 = arith.addf %10, %12 : vector<1x64xf32>
    %14 = math.rsqrt %13 : vector<1x64xf32>
    %15 = arith.mulf %11, %14 : vector<1x64xf32>
    %c1_7 = arith.constant 1 : index
    %c0_8 = arith.constant 0 : index
    %16 = vector.load %arg3[%c1_7, %c0_8] : memref<2x64xf32, #tpu.memory_space<vmem>>, vector<1x64xf32>
    %17 = arith.mulf %5, %15 : vector<1x64xf32>
    %18 = arith.subf %16, %17 : vector<1x64xf32>
    %c0_9 = arith.constant 0 : index
    %c0_10 = arith.constant 0 : index
    %c0_11 = arith.constant 0 : index
    %19 = vector.load %arg1[%c0_9, %c0_10, %c0_11] : memref<2x8x64xf32, #tpu.memory_space<vmem>>, vector<2x8x64xf32>
    %20 = vector.shape_cast %15 : vector<1x64xf32> to vector<1x1x64xf32>
    %21 = vector.broadcast %20 : vector<1x1x64xf32> to vector<2x8x64xf32>
    %22 = arith.mulf %19, %21 : vector<2x8x64xf32>
    %23 = vector.shape_cast %18 : vector<1x64xf32> to vector<1x1x64xf32>
    %24 = vector.broadcast %23 : vector<1x1x64xf32> to vector<2x8x64xf32>
    %25 = arith.addf %22, %24 : vector<2x8x64xf32>
    %c8_i32 = arith.constant 8 : i32
    %26 = arith.muli %arg0, %c8_i32 : i32
    %27 = tpu.iota {dimensions = array<i32: 1>} : vector<1x8x1xi32>
    %28 = vector.broadcast %26 : i32 to vector<1x8x1xi32>
    %29 = arith.addi %28, %27 : vector<1x8x1xi32>
    %c25_i32 = arith.constant 25 : i32
    %30 = vector.broadcast %c25_i32 : i32 to vector<1x8x1xi32>
    %31 = arith.cmpi slt, %29, %30 : vector<1x8x1xi32>
    %cst_12 = arith.constant 0xFF800000 : f32
    %32 = vector.shape_cast %31 : vector<1x8x1xi1> to vector<1x8x1xi1>
    %33 = vector.broadcast %32 : vector<1x8x1xi1> to vector<2x8x64xi1>
    %34 = vector.broadcast %cst_12 : f32 to vector<2x8x64xf32>
    %35 = arith.select %33, %25, %34 : vector<2x8x64xi1>, vector<2x8x64xf32>
    %c0_13 = arith.constant 0 : index
    %c0_14 = arith.constant 0 : index
    %36 = vector.load %arg9[%c0_13, %c0_14] : memref<2x64xf32, #tpu.memory_space<vmem>>, vector<2x64xf32>
    %cst_15 = arith.constant dense<0xFF800000> : vector<2x64xf32>
    %37 = vector.multi_reduction <maximumf>, %35, %cst_15 [1] : vector<2x8x64xf32> to vector<2x64xf32>
    %38 = arith.maximumf %36, %37 : vector<2x64xf32>
    %c0_16 = arith.constant 0 : index
    %c0_17 = arith.constant 0 : index
    %39 = vector.load %arg9[%c0_16, %c0_17] : memref<2x64xf32, #tpu.memory_space<vmem>>, vector<2x64xf32>
    tpu.vector_store %arg9[%c0_16, %c0_17], %38 {strides = array<i32>} : memref<2x64xf32, #tpu.memory_space<vmem>>, vector<2x64xf32>,
    %c3_i32 = arith.constant 3 : i32
    %40 = arith.cmpi eq, %arg0, %c3_i32 : i32
    %41 = arith.extui %40 : i1 to i32
    %c0_i32_18 = arith.constant 0 : i32
    %42 = arith.cmpi ne, %41, %c0_i32_18 : i32
    scf.if %42 {
      %c0_19 = arith.constant 0 : index
      %c0_20 = arith.constant 0 : index
      %43 = vector.load %arg9[%c0_19, %c0_20] : memref<2x64xf32, #tpu.memory_space<vmem>>, vector<2x64xf32>
      %44 = arith.truncf %43 : vector<2x64xf32> to vector<2x64xbf16>
      %c0_21 = arith.constant 0 : index
      %c0_22 = arith.constant 0 : index
      %45 = vector.load %arg4[%c0_21, %c0_22] : memref<64x32xbf16, #tpu.memory_space<vmem>>, vector<64x32xbf16>
      %cst_23 = arith.constant dense<0.000000e+00> : vector<2x32xf32>
      %46 = tpu.matmul %44, %45, %cst_23 {dimension_numbers = #tpu.dot_dimension_numbers<[1], [0], [0], [1], [0, 0, 1, 1], [], []>} : vector<2x64xbf16>, vector<64x32xbf16>, vector<2x32xf32> -> vector<2x32xf32>
      %c0_24 = arith.constant 0 : index
      %c0_25 = arith.constant 0 : index
      %47 = vector.load %arg5[%c0_24, %c0_25] : memref<1x32xf32, #tpu.memory_space<vmem>>, vector<1x32xf32>
      %48 = vector.broadcast %47 : vector<1x32xf32> to vector<2x32xf32>
      %49 = arith.addf %46, %48 : vector<2x32xf32>
      %cst_26 = arith.constant 0.000000e+00 : f32
      %50 = vector.broadcast %cst_26 : f32 to vector<2x32xf32>
      %51 = arith.maximumf %49, %50 : vector<2x32xf32>
      %52 = arith.truncf %51 : vector<2x32xf32> to vector<2x32xbf16>
      %c0_27 = arith.constant 0 : index
      %c0_28 = arith.constant 0 : index
      %53 = vector.load %arg6[%c0_27, %c0_28] : memref<32x128xbf16, #tpu.memory_space<vmem>>, vector<32x128xbf16>
      %cst_29 = arith.constant dense<0.000000e+00> : vector<2x128xf32>
      %54 = tpu.matmul %52, %53, %cst_29 {dimension_numbers = #tpu.dot_dimension_numbers<[1], [0], [0], [1], [0, 0, 1, 1], [], []>} : vector<2x32xbf16>, vector<32x128xbf16>, vector<2x128xf32> -> vector<2x128xf32>
      %c0_30 = arith.constant 0 : index
      %c0_31 = arith.constant 0 : index
      %55 = vector.load %arg7[%c0_30, %c0_31] : memref<1x128xf32, #tpu.memory_space<vmem>>, vector<1x128xf32>
      %56 = vector.broadcast %55 : vector<1x128xf32> to vector<2x128xf32>
      %57 = arith.addf %54, %56 : vector<2x128xf32>
      %58 = arith.negf %57 : vector<2x128xf32>
      %59 = math.exp %58 : vector<2x128xf32>
      %cst_32 = arith.constant 1.000000e+00 : f32
      %60 = vector.broadcast %cst_32 : f32 to vector<2x128xf32>
      %61 = arith.addf %60, %59 : vector<2x128xf32>
      %62 = arith.divf %60, %61 : vector<2x128xf32>
      %c0_33 = arith.constant 0 : index
      %c0_34 = arith.constant 0 : index
      %63 = vector.load %arg8[%c0_33, %c0_34] : memref<2x128xf32, #tpu.memory_space<vmem>>, vector<2x128xf32>
      tpu.vector_store %arg8[%c0_33, %c0_34], %62 {strides = array<i32>} : memref<2x128xf32, #tpu.memory_space<vmem>>, vector<2x128xf32>,
    } else {
    }
    return
  }
  func.func @transform_0(%arg0: i32) -> (i32, i32, i32) {
    %c0_i32 = arith.constant 0 : i32
    %c0_i32_0 = arith.constant 0 : i32
    %c0_i32_1 = arith.constant 0 : i32
    return %c0_i32, %arg0, %c0_i32_0 : i32, i32, i32
  }
  func.func @transform_1(%arg0: i32) -> (i32, i32) {
    %c0_i32 = arith.constant 0 : i32
    %c0_i32_0 = arith.constant 0 : i32
    %c0_i32_1 = arith.constant 0 : i32
    return %c0_i32, %c0_i32_0 : i32, i32
  }
  func.func @transform_2(%arg0: i32) -> (i32, i32) {
    %c0_i32 = arith.constant 0 : i32
    %c0_i32_0 = arith.constant 0 : i32
    %c0_i32_1 = arith.constant 0 : i32
    return %c0_i32, %c0_i32_0 : i32, i32
  }
  func.func @transform_3(%arg0: i32) -> (i32, i32) {
    %c0_i32 = arith.constant 0 : i32
    %c0_i32_0 = arith.constant 0 : i32
    %c0_i32_1 = arith.constant 0 : i32
    return %c0_i32, %c0_i32_0 : i32, i32
  }
  func.func @transform_4(%arg0: i32) -> (i32, i32) {
    %c0_i32 = arith.constant 0 : i32
    %c0_i32_0 = arith.constant 0 : i32
    %c0_i32_1 = arith.constant 0 : i32
    return %c0_i32, %c0_i32_0 : i32, i32
  }
  func.func @transform_5(%arg0: i32) -> (i32, i32) {
    %c0_i32 = arith.constant 0 : i32
    %c0_i32_0 = arith.constant 0 : i32
    %c0_i32_1 = arith.constant 0 : i32
    return %c0_i32, %c0_i32_0 : i32, i32
  }
  func.func @transform_6(%arg0: i32) -> (i32, i32) {
    %c0_i32 = arith.constant 0 : i32
    %c0_i32_0 = arith.constant 0 : i32
    %c0_i32_1 = arith.constant 0 : i32
    return %c0_i32, %c0_i32_0 : i32, i32
  }
  func.func @transform_7(%arg0: i32) -> (i32, i32) {
    %c0_i32 = arith.constant 0 : i32
    %c0_i32_0 = arith.constant 0 : i32
    %c0_i32_1 = arith.constant 0 : i32
    return %c0_i32, %c0_i32_0 : i32, i32
  }
}

</mosaic_0001>

<bundles_post_ra>
// kernel: audio_classifier_forward.5
= control target key start
LH: loop header
LB: loop body
LE: loop exit
PB: predicated region body
PF: predicated region fallthrough
CT: control target
= control target key end

     0   :  { %s381_s12 = smov 0   ;;  %s422_s0 = inlined_call_operand.vmem [shape: f32[192,16], index: 0, kind: input, shape index: {}]   ;;  %s423_s1 = inlined_call_operand.vmem [shape: f32[2,16], index: 1, kind: input, shape index: {}]   ;;  %s424_s2 = inlined_call_operand.vmem [shape: f32[2,16], index: 2, kind: input, shape index: {}]   ;;  %s425_s3 = inlined_call_operand.vmem [shape: bf16[192,16], index: 3, kind: output, shape index: {}]  }
   0x1 LB: > { %s316_s13 = sadd.s32 4294967295, %s359_s12   ;;  %p320_p0 = scmp.ge.s32.totalorder %s359_s12, 1  ;;  %s359_s12 = sphi %s381_s12, %s13_s12  }
   0x2   : > { %p138_p1 = scmp.lt.s32.totalorder %s359_s12, 4 }
   0x4   : > { %p139_p2 = pnand %p320_p0, %p138_p1 }
   0x5   : > { %s321_s18 = sshll.u32 (!%p139_p2), %s316_s13, 3 }
   0x6   : > { %142 = sbr.rel (%p139_p2) target bundleno = 50 (0x32), region = 32  ;;  %p163_p3 = scmp.lt.s32.totalorder (!%p139_p2), %s321_s18, 23 }
   0xb   : > { %v174_v0 = vld [vmem:[%s423_s1] sm:$0x1]  ;;  %v176_v1 = vld [vmem:[%s423_s1 + $0x1] sm:$0x1]  ;;  %s427_s18 = smov (!%p163_p3, %s321_s18), 23  ;;  %v195_v7 = vlaneseq  ;;  %vm251_vm0 = vcmask 125952  }
   0xc   : > { %v175_v2 = vmul.f32 0.0061728396, %v174_v0  ;;  %v177_v3 = vmul.f32 0.0061728396, %v176_v1  ;;  %s322_s19 = sshll.u32 %s427_s18, 3  ;;  %s324_s27 = sshll.u32 %s427_s18, 2 }
   0xd   : > { %v196_v8 = vshrl.u32 %v195_v7, 7  ;;  %s166_s22 = scalar_lea.vmem %s422_s0, %s322_s19  ;;  %v180_v9 = vld [vmem:[%s424_s2] sm:$0x1]  ;;  %v184_v13 = vld [vmem:[%s424_s2 + $0x1] sm:$0x1]  ;;  %s172_s30 = scalar_lea.vmem %s425_s3, %s324_s27 }
   0xe   : > { %v178_v4 = vmul.f32 %v175_v2, %v175_v2  ;;  %v187_v14 = vld [vmem:[%s166_s22] sm:$0xff]  ;;  %v188_v15 = vld [vmem:[%s166_s22 + $0x8] sm:$0xff]  ;;  %v189_v16 = vld [vmem:[%s166_s22 + $0x10] sm:$0xff] }
   0xf   : > { %v197_v10 = vsub.s32 0, %v196_v8  ;;  %v190_v17 = vld [vmem:[%s166_s22 + $0x18] sm:$0xff]  ;;  %v191_v20 = vld [vmem:[%s166_s22 + $0x20] sm:$0xff]  ;;  %v192_v21 = vld [vmem:[%s166_s22 + $0x28] sm:$0xff] }
  0x10   : > { %v179_v5 = vsub.f32 %v177_v3, %v178_v4  ;;  %v193_v22 = vld [vmem:[%s166_s22 + $0x30] sm:$0xff]  ;;  %v194_v23 = vld [vmem:[%s166_s22 + $0x38] sm:$0xff] }
  0x12   : > { %v181_v6 = vadd.f32 1e-05, %v179_v5 }
  0x14   : > { %351 = vrsqrt.f32 %v181_v6 }
  0x21   : > { %v352_v11 = vpop.eup %351 }
  0x22   : > { %v183_v12 = vmul.f32 %v352_v11, %v180_v9 }
  0x24   : > { %v185_v18 = vmul.f32 %v183_v12, %v175_v2  ;;  %v198_v19 = vrot.slane %v183_v12, %v197_v10 }
  0x26   : > { %v186_v24 = vsub.f32 %v184_v13, %v185_v18  ;;  %v199_v25 = vmul.f32 %v198_v19, %v187_v14  ;;  %v200_v26 = vmul.f32 %v198_v19, %v188_v15  ;;  %v201_v27 = vmul.f32 %v198_v19, %v189_v16 }
  0x27   : > { %v202_v28 = vmul.f32 %v198_v19, %v190_v17  ;;  %v203_v29 = vmul.f32 %v198_v19, %v191_v20  ;;  %v204_v30 = vmul.f32 %v198_v19, %v192_v21  ;;  %v205_v31 = vmul.f32 %v198_v19, %v193_v22 }
  0x28   : > { %v210_v32 = vrot.slane %v186_v24, %v197_v10  ;;  %v206_v33 = vmul.f32 %v198_v19, %v194_v23 }
  0x2a   : > { %v211_v34 = vadd.f32 %v210_v32, %v199_v25  ;;  %v212_v35 = vadd.f32 %v210_v32, %v200_v26  ;;  %v213_v36 = vadd.f32 %v210_v32, %v201_v27  ;;  %v214_v37 = vadd.f32 %v210_v32, %v202_v28 }
  0x2b   : > { %v215_v38 = vadd.f32 %v210_v32, %v203_v29  ;;  %v216_v39 = vadd.f32 %v210_v32, %v204_v30  ;;  %v217_v40 = vadd.f32 %v210_v32, %v205_v31  ;;  %v218_v41 = vadd.f32 %v210_v32, %v206_v33 }
  0x2c   : > { %v335_v42 = vpack.c.bf16 %v211_v34, %v211_v34  ;;  %v336_v43 = vpack.c.bf16 %v212_v35, %v212_v35  ;;  %v337_v44 = vpack.c.bf16 %v213_v36, %v213_v36  ;;  %v338_v45 = vpack.c.bf16 %v214_v37, %v214_v37 }
  0x2d   : > { %v339_v46 = vpack.c.bf16 %v215_v38, %v215_v38  ;;  %v340_v47 = vpack.c.bf16 %v216_v39, %v216_v39  ;;  %v341_v48 = vpack.c.bf16 %v217_v40, %v217_v40  ;;  %v342_v49 = vpack.c.bf16 %v218_v41, %v218_v41 }
  0x2e   : > { %252 = vst.msk [vmem:[%s172_s30] sm:$0xf] %vm251_vm0, %v335_v42  ;;  %253 = vst.msk [vmem:[%s172_s30 + $0x4] sm:$0xf] %vm251_vm0, %v336_v43 }
  0x2f   : > { %254 = vst.msk [vmem:[%s172_s30 + $0x8] sm:$0xf] %vm251_vm0, %v337_v44  ;;  %255 = vst.msk [vmem:[%s172_s30 + $0xc] sm:$0xf] %vm251_vm0, %v338_v45 }
  0x30   : > { %256 = vst.msk [vmem:[%s172_s30 + $0x10] sm:$0xf] %vm251_vm0, %v339_v46  ;;  %257 = vst.msk [vmem:[%s172_s30 + $0x14] sm:$0xf] %vm251_vm0, %v340_v47 }
  0x31   : > { %258 = vst.msk [vmem:[%s172_s30 + $0x18] sm:$0xf] %vm251_vm0, %v341_v48  ;;  %259 = vst.msk [vmem:[%s172_s30 + $0x1c] sm:$0xf] %vm251_vm0, %v342_v49 }
  0x32 PF: > { %s13_s12 = sadd.s32 1, %s359_s12  }
  0x33   : > { %p10_p4 = scmp.ge.s32.totalorder %s13_s12, 5  }
  0x35   :  { %12 = sbr.rel (!%p10_p4) target bundleno = 1 (0x1), region = 62 }

// kernel: audio_classifier_forward.4
= control target key start
LH: loop header
LB: loop body
LE: loop exit
PB: predicated region body
PF: predicated region fallthrough
CT: control target
= control target key end

     0   :  { %s638_s15 = smov 0   ;;  %s715_s0 = inlined_call_operand.vmem [shape: bf16[192,16], index: 0, kind: input, shape index: {}]   ;;  %s716_s1 = inlined_call_operand.vmem [shape: bf16[16,16], index: 1, kind: input, shape index: {}]   ;;  %s717_s2 = inlined_call_operand.vmem [shape: f32[1,16], index: 2, kind: input, shape index: {}]   ;;  %s718_s3 = inlined_call_operand.vmem [shape: f32[192,16], index: 3, kind: output, shape index: {0}]   ;;  %s719_s4 = inlined_call_operand.vmem [shape: f32[3,2,16], index: 4, kind: output, shape index: {1}]  }
   0x1 LB: > { %s644_s16 = sadd.s32 4294967295, %s610_s15   ;;  %p546_p0 = scmp.ge.s32.totalorder %s610_s15, 1  ;;  %s610_s15 = sphi %s638_s15, %s15_s15  }
   0x2   : > { %p166_p1 = scmp.lt.s32.totalorder %s610_s15, 4 }
   0x4   : > { %p167_p2 = pnand %p546_p0, %p166_p1 }
   0x5   : > { %s547_s19 = sshll.u32 (!%p167_p2), %s644_s16, 3  ;;  %s562_s24 = sshll.u32 (!%p167_p2), %s644_s16, 6 }
   0x6   : > { %170 = sbr.rel (%p167_p2) target bundleno = 252 (0xfc), region = 32  ;;  %p197_p3 = scmp.lt.s32.totalorder (!%p167_p2), %s547_s19, 23 }
   0x7   : > { %p208_p4 = scmp.lt.s32.totalorder (!%p167_p2), %s644_s16, 2 }
   0xb   : > { %v599_v0 = vld [vmem:[%s716_s1] sm:$0xff]   ;;  %s721_s19 = smov (!%p197_p3, %s547_s19), 23  ;;  %vm256_vm0 = vcmask 130048   ;;  %v351_v5 = vlaneseq  ;;  %v360_v8 = vstv %s562_s24  ;;  %v612_v32 = vmov 0.0   ;;  %s723_s16 = smov (!%p208_p4, %s644_s16), 2 }
   0xc   : > { %578 = vmatprep.subr.bf16.mxu0 %v599_v0  ;;  %588 = vmatprep.subr.bf16.mxu1 %v599_v0  ;;  %s548_s20 = sshll.u32 %s721_s19, 2  ;;  %v552_v9 = vld [vmem:[%s717_s2] ss:$0 sm:$0xff]  ;;  %s550_s27 = sshll.u32 %s721_s19, 3  ;;  %vm451_vm9 = vcmask 1040384   ;;  %vm453_vm10 = vcmask 123904  }
   0xd   : > { %579 = vmatpush3.bf16.msra.mxu0 %v599_v0  ;;  %589 = vmatpush3.bf16.msra.mxu1 %v599_v0  ;;  %s200_s23 = scalar_lea.vmem %s715_s0, %s548_s20  ;;  %v352_v6 = vshrl.u32 %v351_v5, 7  ;;  %s666_s30 = scalar_lea.vmem %s718_s3, %s550_s27 }
   0xe   : > { %v600_v1 = vld [vmem:[%s200_s23] sm:$0xff]   ;;  %v601_v2 = vld [vmem:[%s200_s23 + $0x8] sm:$0xff]   ;;  %v602_v3 = vld [vmem:[%s200_s23 + $0x10] sm:$0xff]   ;;  %s551_s5 = sshll.u32 %s723_s16, 1 }
   0xf   : > { %580 = vmatprep.mubr.msk.bf16.mxu0 %vm256_vm0, %v600_v1  ;;  %v603_v4 = vld [vmem:[%s200_s23 + $0x18] sm:$0xff]   ;;  %584 = vmatprep.mubr.msk.bf16.mxu1 %vm256_vm0, %v602_v3  ;;  %v354_v7 = vadd.s32 16, %v352_v6  ;;  %v361_v10 = vadd.s32 %v360_v8, %v352_v6  ;;  %v355_v11 = vadd.s32 24, %v352_v6  ;;  %v353_v12 = vadd.s32 8, %v352_v6  ;;  %s211_s8 = scalar_lea.vmem %s719_s4, %s551_s5 }
  0x10   : > { %581 = vmatmul.mubr.msk.bf16.vlgmr.msra.gmra.mxu0 %vm256_vm0, %v601_v2  ;;  %585 = vmatmul.mubr.msk.bf16.vlgmr.msra.gmra.mxu1 %vm256_vm0, %v603_v4  ;;  %v356_v16 = vadd.s32 32, %v352_v6  ;;  %v358_v19 = vadd.s32 48, %v352_v6  ;;  %v357_v25 = vadd.s32 40, %v352_v6  ;;  %v359_v37 = vadd.s32 56, %v352_v6 }
  0x11   : > { %v363_v14 = vadd.s32 %v360_v8, %v354_v7  ;;  %vm369_vm1 = vcmp.lt.s32.totalorder %v361_v10, 162  ;;  %v364_v20 = vadd.s32 %v360_v8, %v355_v11  ;;  %v362_v21 = vadd.s32 %v360_v8, %v353_v12 }
  0x12   : > { %v365_v31 = vadd.s32 %v360_v8, %v356_v16  ;;  %v563_v33 = vsel %vm369_vm1, 1.0, %v612_v32  ;;  %v367_v39 = vadd.s32 %v360_v8, %v358_v19  ;;  %v366_v40 = vadd.s32 %v360_v8, %v357_v25 }
  0x13   : > { %vm371_vm2 = vcmp.lt.s32.totalorder %v363_v14, 162  ;;  %vm372_vm3 = vcmp.lt.s32.totalorder %v364_v20, 162  ;;  %vm370_vm4 = vcmp.lt.s32.totalorder %v362_v21, 162  ;;  %v368_v51 = vadd.s32 %v360_v8, %v359_v37 }
  0x14   : > { %v565_v38 = vsel %vm371_vm2, 1.0, %v612_v32  ;;  %v566_v47 = vsel %vm372_vm3, 1.0, %v612_v32  ;;  %vm373_vm5 = vcmp.lt.s32.totalorder %v365_v31, 162  ;;  %v564_v50 = vsel %vm370_vm4, 1.0, %v612_v32 }
  0x15   : > { %vm374_vm6 = vcmp.lt.s32.totalorder %v366_v40, 162  ;;  %vm375_vm7 = vcmp.lt.s32.totalorder %v367_v39, 162  ;;  %v567_v54 = vsel %vm373_vm5, 1.0, %v612_v32  ;;  %vm376_vm8 = vcmp.lt.s32.totalorder %v368_v51, 162 }
  0x16   : > { %v568_v60 = vsel %vm374_vm6, 1.0, %v612_v32  ;;  %v569_v2 = vsel %vm375_vm7, 1.0, %v612_v32  ;;  %v570_v10 = vsel %vm376_vm8, 1.0, %v612_v32 }
  0xd0   : > { %v582_v13 = vpop.f32.mrf.mxu0  ;;  %v586_v18 = vpop.f32.mrf.mxu1 }
  0xd1   : > { %v312_v15 = vadd.f32 %v582_v13, %v552_v9  ;;  %v668_v24 = vadd.f32 %v586_v18, %v552_v9 }
  0xd2   : > { %v303_v17 = vpop.f32.mrf.mxu0  ;;  %v319_v27 = vpop.f32.mrf.mxu1 }
  0xd3   : > { %v336_v22 = vmax.f32 %v312_v15, 0.0  ;;  %v304_v23 = vadd.f32 %v552_v9, %v303_v17  ;;  %v340_v29 = vmax.f32 %v668_v24, 0.0  ;;  %v320_v34 = vadd.f32 %v552_v9, %v319_v27 }
  0xd4   : > { %v583_v26 = vpop.f32.mrf.mxu0  ;;  %v587_v36 = vpop.f32.mrf.mxu1 }
  0xd5   : > { %344 = vst.msk [vmem:[%s666_s30 + $0x10] sm:$0xff] %vm256_vm0, %v336_v22  ;;  %v334_v28 = vmax.f32 %v304_v23, 0.0  ;;  %v315_v30 = vadd.f32 %v583_v26, %v552_v9  ;;  %348 = vst.msk [vmem:[%s666_s30 + $0x30] sm:$0xff] %vm256_vm0, %v340_v29  ;;  %v338_v42 = vmax.f32 %v320_v34, 0.0  ;;  %v331_v44 = vadd.f32 %v587_v36, %v552_v9 }
  0xd6   : > { %v306_v35 = vpop.f32.mrf.mxu0  ;;  %v322_v45 = vpop.f32.mrf.mxu1  ;;  %v395_v48 = vmul.f32 %v565_v38, %v336_v22  ;;  %v399_v12 = vmul.f32 %v569_v2, %v340_v29 }
  0xd7   : > { %342 = vst.msk [vmem:[%s666_s30] sm:$0xff] %vm256_vm0, %v334_v28  ;;  %v337_v41 = vmax.f32 %v315_v30, 0.0  ;;  %v307_v43 = vadd.f32 %v552_v9, %v306_v35  ;;  %v393_v46 = vmul.f32 %v563_v33, %v334_v28  ;;  %346 = vst.msk [vmem:[%s666_s30 + $0x20] sm:$0xff] %vm256_vm0, %v338_v42  ;;  %v341_v52 = vmax.f32 %v331_v44, 0.0 }
  0xd8   : > { %v323_v53 = vadd.f32 %v552_v9, %v322_v45  ;;  %v424_v59 = vmul.f32 %v395_v48, %v395_v48  ;;  %v397_v62 = vmul.f32 %v567_v54, %v338_v42  ;;  %v404_v1 = vsel %vm256_vm0, %v395_v48, 0.0 }
  0xd9   : > { %345 = vst.msk [vmem:[%s666_s30 + $0x18] sm:$0xff] %vm256_vm0, %v337_v41  ;;  %v335_v49 = vmax.f32 %v307_v43, 0.0  ;;  %v422_v55 = vmul.f32 %v393_v46, %v393_v46  ;;  %v396_v56 = vmul.f32 %v566_v47, %v337_v41  ;;  %349 = vst.msk [vmem:[%s666_s30 + $0x38] sm:$0xff] %vm256_vm0, %v341_v52  ;;  %v401_v61 = vsel %vm256_vm0, %v393_v46, 0.0 }
  0xda   : > { %v339_v58 = vmax.f32 %v323_v53, 0.0  ;;  %v433_v11 = vsel %vm256_vm0, %v424_v59, 0.0  ;;  %v426_v14 = vmul.f32 %v397_v62, %v397_v62  ;;  %v408_v18 = vsel %vm256_vm0, %v397_v62, 0.0 }
  0xdb   : > { %343 = vst.msk [vmem:[%s666_s30 + $0x8] sm:$0xff] %vm256_vm0, %v335_v49  ;;  %v394_v57 = vmul.f32 %v564_v50, %v335_v49  ;;  %v430_v4 = vsel %vm256_vm0, %v422_v55, 0.0  ;;  %v425_v5 = vmul.f32 %v396_v56, %v396_v56  ;;  %v406_v13 = vsel %vm256_vm0, %v396_v56, 0.0 }
  0xdc   : > { %347 = vst.msk [vmem:[%s666_s30 + $0x28] sm:$0xff] %vm256_vm0, %v339_v58  ;;  %v398_v7 = vmul.f32 %v568_v60, %v339_v58  ;;  %v400_v19 = vmul.f32 %v570_v10, %v341_v52  ;;  %v428_v23 = vmul.f32 %v399_v12, %v399_v12  ;;  %v437_v24 = vsel %vm256_vm0, %v426_v14, 0.0 }
  0xdd   : > { %v402_v63 = vsel %vm256_vm0, %v394_v57, 0.0  ;;  %v423_v0 = vmul.f32 %v394_v57, %v394_v57  ;;  %v435_v17 = vsel %vm256_vm0, %v425_v5, 0.0  ;;  %v412_v28 = vsel %vm256_vm0, %v399_v12, 0.0 }
  0xde   : > { %v403_v3 = vadd.f32 %v402_v63, %v401_v61  ;;  %v427_v20 = vmul.f32 %v398_v7, %v398_v7  ;;  %v410_v25 = vsel %vm256_vm0, %v398_v7, 0.0  ;;  %v429_v29 = vmul.f32 %v400_v19, %v400_v19 }
  0xdf   : > { %v431_v6 = vsel %vm256_vm0, %v423_v0, 0.0  ;;  %v441_v33 = vsel %vm256_vm0, %v428_v23, 0.0  ;;  %v414_v34 = vsel %vm256_vm0, %v400_v19, 0.0 }
  0xe0   : > { %v405_v8 = vadd.f32 %v404_v1, %v403_v3  ;;  %v432_v9 = vadd.f32 %v431_v6, %v430_v4  ;;  %v439_v30 = vsel %vm256_vm0, %v427_v20, 0.0  ;;  %v443_v37 = vsel %vm256_vm0, %v429_v29, 0.0 }
  0xe2   : > { %v434_v15 = vadd.f32 %v433_v11, %v432_v9  ;;  %v407_v16 = vadd.f32 %v406_v13, %v405_v8 }
  0xe4   : > { %v409_v21 = vadd.f32 %v408_v18, %v407_v16  ;;  %v436_v22 = vadd.f32 %v435_v17, %v434_v15 }
  0xe6   : > { %v411_v26 = vadd.f32 %v410_v25, %v409_v21  ;;  %v438_v27 = vadd.f32 %v437_v24, %v436_v22 }
  0xe8   : > { %v413_v31 = vadd.f32 %v412_v28, %v411_v26  ;;  %v440_v32 = vadd.f32 %v439_v30, %v438_v27 }
  0xea   : > { %v415_v35 = vadd.f32 %v414_v34, %v413_v31  ;;  %v442_v36 = vadd.f32 %v441_v33, %v440_v32 }
  0xec   : > { %v416_v38 = vrot.slane %v415_v35, 4  ;;  %v444_v39 = vadd.f32 %v443_v37, %v442_v36 }
  0xee   : > { %v417_v40 = vadd.f32 %v416_v38, %v415_v35  ;;  %v445_v41 = vrot.slane %v444_v39, 4 }
  0xf0   : > { %v418_v42 = vrot.slane %v417_v40, 2  ;;  %v446_v43 = vadd.f32 %v445_v41, %v444_v39 }
  0xf2   : > { %v419_v44 = vadd.f32 %v418_v42, %v417_v40  ;;  %v447_v45 = vrot.slane %v446_v43, 2 }
  0xf4   : > { %v420_v46 = vrot.slane %v419_v44, 1  ;;  %v448_v47 = vadd.f32 %v447_v45, %v446_v43 }
  0xf6   : > { %v449_v48 = vrot.slane %v448_v47, 1  ;;  %v421_v49 = vadd.f32 %v420_v46, %v419_v44 }
  0xf8   : > { %v450_v50 = vadd.f32 %v449_v48, %v448_v47 }
  0xfa   : > { %v452_v51 = vsel %vm451_vm9, %v421_v49, %v450_v50 }
  0xfb   : > { %454 = vst.msk [vmem:[%s211_s8] sm:$0x3] %vm453_vm10, %v452_v51 }
  0xfc PF: > { %s15_s15 = sadd.s32 1, %s610_s15  }
  0xfd   : > { %p12_p5 = scmp.ge.s32.totalorder %s15_s15, 5  }
  0xff   :  { %14 = sbr.rel (!%p12_p5) target bundleno = 1 (0x1), region = 74 }

// kernel: audio_classifier_forward.6
= control target key start
LH: loop header
LB: loop body
LE: loop exit
PB: predicated region body
PF: predicated region fallthrough
CT: control target
= control target key end

     0   :  { %v412_v0 = vmov 0   ;;  %vm140_vm0 = vcmask 130048   ;;  %v236_v21 = vlaneseq  ;;  %vm226_vm1 = vcmask 523264   ;;  %s548_s1 = inlined_call_operand.vmem [shape: bf16[144,64], index: 1, kind: input, shape index: {}]   ;;  %s549_s0 = inlined_call_operand.vmem [shape: bf16[64,144], index: 0, kind: input, shape index: {}]   ;;  %s550_s2 = inlined_call_operand.vmem [shape: f32[1,64], index: 2, kind: input, shape index: {}]   ;;  %s551_s3 = inlined_call_operand.vmem [shape: f32[64,64], index: 3, kind: output, shape index: {0}]   ;;  %s552_s4 = inlined_call_operand.vmem [shape: f32[1,2,64], index: 4, kind: output, shape index: {1}]  }
   0x1   :  { %153 = vmatprep.subr.bf16.mxu0 %v412_v0  ;;  %371 = vmatprep.subr.bf16.mxu1 %v412_v0  ;;  %v391_v1 = vld [vmem:[%s548_s1 + $0x38] sm:$0xff]   ;;  %v392_v2 = vld [vmem:[%s548_s1 + $0x30] sm:$0xff]   ;;  %v393_v3 = vld [vmem:[%s548_s1 + $0x28] sm:$0xff]   ;;  %v413_v60 = vmov 0.0   ;;  %vm336_vm3 = vcmask 1040384   ;;  %vm338_vm4 = vcmask 517120  }
   0x2   :  { %154 = vmatpush1.bf16.msra.mxu0 %v391_v1  ;;  %380 = vmatpush1.bf16.msra.mxu1 %v391_v1  ;;  %v394_v4 = vld [vmem:[%s548_s1 + $0x20] sm:$0xff]   ;;  %v395_v7 = vld [vmem:[%s548_s1 + $0x18] sm:$0xff]   ;;  %v396_v8 = vld [vmem:[%s548_s1 + $0x10] sm:$0xff]   ;;  %v237_v30 = vshrl.u32 %v236_v21, 7 }
   0x3   :  { %155 = vmatprep.subr.bf16.mxu0 %v412_v0  ;;  %372 = vmatprep.subr.bf16.mxu1 %v412_v0  ;;  %v402_v5 = vld [vmem:[%s549_s0 + $0x4] ss:$8 sps:$4 sm:$0xff]   ;;  %v400_v12 = vld [vmem:[%s549_s0] ss:$8 sps:$4 sm:$0xff]   ;;  %v406_v14 = vld [vmem:[%s549_s0 + $0x14] ss:$8 sps:$4 sm:$0xff]  }
   0x4   :  { %v405_v6 = vld [vmem:[%s549_s0 + $0x24] ss:$8 sps:$4 sm:$0xff]   ;;  %366 = vmatprep.mubr.msk.bf16.mxu0 %vm140_vm0, %v402_v5  ;;  %v403_v13 = vld [vmem:[%s549_s0 + $0x20] ss:$8 sps:$4 sm:$0xff]   ;;  %v408_v15 = vld [vmem:[%s549_s0 + $0x34] ss:$8 sps:$4 sm:$0xff]  }
   0x5   :  { %368 = vmatprep.mubr.msk.bf16.mxu1 %vm140_vm0, %v405_v6  ;;  %v397_v9 = vld [vmem:[%s548_s1 + $0x8] sm:$0xff]   ;;  %v398_v10 = vld [vmem:[%s548_s1] sm:$0xff]   ;;  %v410_v16 = vld [vmem:[%s549_s0 + $0x10] ss:$8 sps:$4 sm:$0xff]   ;;  %v243_v39 = vadd.s32 48, %v237_v30 }
   0x6   :  { %156 = vmatpush1.bf16.msra.mxu0 %v392_v2  ;;  %381 = vmatpush1.bf16.msra.mxu1 %v392_v2  ;;  %v399_v11 = vld [vmem:[%s548_s1 + $0x40] sm:$0xff]   ;;  %v411_v17 = vld [vmem:[%s549_s0 + $0x30] ss:$8 sps:$4 sm:$0xff]  }
   0x7   :  { %157 = vmatprep.subr.bf16.mxu0 %v412_v0  ;;  %373 = vmatprep.subr.bf16.mxu1 %v412_v0  ;;  %v348_v18 = vld [vmem:[%s550_s2] ss:$0 sm:$0xff]  ;;  %vm260_vm2 = vcmp.lt.s32.totalorder %v243_v39, 50 }
   0x8   :  { %v370_v61 = vsel %vm260_vm2, 1.0, %v413_v60 }
   0xa   :  { %158 = vmatpush1.bf16.msra.mxu0 %v393_v3  ;;  %382 = vmatpush1.bf16.msra.mxu1 %v393_v3 }
   0xb   :  { %159 = vmatprep.subr.bf16.mxu0 %v412_v0  ;;  %374 = vmatprep.subr.bf16.mxu1 %v412_v0 }
   0xe   :  { %160 = vmatpush1.bf16.msra.mxu0 %v394_v4  ;;  %383 = vmatpush1.bf16.msra.mxu1 %v394_v4 }
   0xf   :  { %161 = vmatprep.subr.bf16.mxu0 %v412_v0  ;;  %375 = vmatprep.subr.bf16.mxu1 %v412_v0 }
  0x12   :  { %162 = vmatpush1.bf16.msra.mxu0 %v395_v7  ;;  %384 = vmatpush1.bf16.msra.mxu1 %v395_v7 }
  0x13   :  { %163 = vmatprep.subr.bf16.mxu0 %v412_v0  ;;  %376 = vmatprep.subr.bf16.mxu1 %v412_v0 }
  0x16   :  { %164 = vmatpush1.bf16.msra.mxu0 %v396_v8  ;;  %385 = vmatpush1.bf16.msra.mxu1 %v396_v8 }
  0x17   :  { %165 = vmatprep.subr.bf16.mxu0 %v412_v0  ;;  %377 = vmatprep.subr.bf16.mxu1 %v412_v0 }
  0x1a   :  { %166 = vmatpush1.bf16.msra.mxu0 %v397_v9  ;;  %386 = vmatpush1.bf16.msra.mxu1 %v397_v9 }
  0x1b   :  { %167 = vmatprep.subr.bf16.mxu0 %v412_v0  ;;  %378 = vmatprep.subr.bf16.mxu1 %v412_v0 }
  0x1e   :  { %168 = vmatpush1.bf16.msra.mxu0 %v398_v10  ;;  %387 = vmatpush1.bf16.msra.mxu1 %v398_v10 }
  0x1f   :  { %183 = vmatprep.subr.bf16.mxu0 %v412_v0  ;;  %379 = vmatprep.subr.bf16.mxu1 %v412_v0 }
  0x22   :  { %184 = vmatpush2.bf16.msra.mxu0 %v399_v11  ;;  %388 = vmatpush2.bf16.msra.mxu1 %v399_v11 }
  0x25   :  { %186 = vmatmul.mubr.bf16.vlgmr.msra.gmra.mxu0 %v400_v12  ;;  %202 = vmatmul.mubr.bf16.vlgmr.msra.gmra.mxu1 %v403_v13 }
  0x26   :  { %367 = vmatprep.mubr.msk.bf16.mxu0 %vm140_vm0, %v406_v14  ;;  %369 = vmatprep.mubr.msk.bf16.mxu1 %vm140_vm0, %v408_v15 }
  0x2d   :  { %194 = vmatmul.mubr.bf16.gmra.mxu0 %v410_v16  ;;  %210 = vmatmul.mubr.bf16.gmra.mxu1 %v411_v17 }
  0xe5   :  { %v187_v19 = vpop.f32.mrf.mxu0  ;;  %v203_v20 = vpop.f32.mrf.mxu1 }
  0xe6   :  { %v188_v22 = vadd.f32 %v348_v18, %v187_v19  ;;  %v204_v23 = vadd.f32 %v348_v18, %v203_v20 }
  0xe7   :  { %v189_v24 = vpop.f32.mrf.mxu0  ;;  %v205_v25 = vpop.f32.mrf.mxu1 }
  0xe8   :  { %v218_v26 = vmax.f32 %v188_v22, 0.0  ;;  %v222_v27 = vmax.f32 %v204_v23, 0.0 }
  0xe9   :  { %v190_v28 = vpop.f32.mrf.mxu0  ;;  %v206_v29 = vpop.f32.mrf.mxu1 }
  0xea   :  { %227 = vst.msk [vmem:[%s551_s3] sm:$0xff] %vm226_vm1, %v218_v26  ;;  %231 = vst.msk [vmem:[%s551_s3 + $0x20] sm:$0xff] %vm226_vm1, %v222_v27  ;;  %v191_v31 = vadd.f32 %v348_v18, %v190_v28  ;;  %v207_v32 = vadd.f32 %v348_v18, %v206_v29  ;;  %v307_v47 = vmul.f32 %v218_v26, %v218_v26  ;;  %v286_v51 = vsel %vm226_vm1, %v218_v26, 0.0 }
  0xeb   :  { %v192_v33 = vpop.f32.mrf.mxu0  ;;  %v208_v34 = vpop.f32.mrf.mxu1  ;;  %v311_v4 = vmul.f32 %v222_v27, %v222_v27  ;;  %v293_v10 = vsel %vm226_vm1, %v222_v27, 0.0 }
  0xec   :  { %v219_v35 = vmax.f32 %v191_v31, 0.0  ;;  %v223_v36 = vmax.f32 %v207_v32, 0.0  ;;  %v315_v62 = vsel %vm226_vm1, %v307_v47, 0.0 }
  0xed   :  { %v195_v37 = vpop.f32.mrf.mxu0  ;;  %v211_v38 = vpop.f32.mrf.mxu1  ;;  %v322_v16 = vsel %vm226_vm1, %v311_v4, 0.0 }
  0xee   :  { %v196_v40 = vadd.f32 %v348_v18, %v195_v37  ;;  %v212_v41 = vadd.f32 %v348_v18, %v211_v38  ;;  %228 = vst.msk [vmem:[%s551_s3 + $0x8] sm:$0xff] %vm226_vm1, %v219_v35  ;;  %v308_v42 = vmul.f32 %v219_v35, %v219_v35  ;;  %232 = vst.msk [vmem:[%s551_s3 + $0x28] sm:$0xff] %vm226_vm1, %v223_v36  ;;  %v287_v48 = vsel %vm226_vm1, %v219_v35, 0.0 }
  0xef   :  { %v197_v43 = vpop.f32.mrf.mxu0  ;;  %v213_v44 = vpop.f32.mrf.mxu1  ;;  %v288_v59 = vadd.f32 %v287_v48, %v286_v51  ;;  %v312_v11 = vmul.f32 %v223_v36, %v223_v36  ;;  %v295_v17 = vsel %vm226_vm1, %v223_v36, 0.0 }
  0xf0   :  { %v220_v45 = vmax.f32 %v196_v40, 0.0  ;;  %v224_v46 = vmax.f32 %v212_v41, 0.0  ;;  %v316_v53 = vsel %vm226_vm1, %v308_v42, 0.0 }
  0xf1   :  { %v198_v49 = vpop.f32.mrf.mxu0  ;;  %v214_v50 = vpop.f32.mrf.mxu1  ;;  %v317_v2 = vadd.f32 %v316_v53, %v315_v62  ;;  %v324_v21 = vsel %vm226_vm1, %v312_v11, 0.0 }
  0xf2   :  { %229 = vst.msk [vmem:[%s551_s3 + $0x10] sm:$0xff] %vm226_vm1, %v220_v45  ;;  %v309_v52 = vmul.f32 %v220_v45, %v220_v45  ;;  %233 = vst.msk [vmem:[%s551_s3 + $0x30] sm:$0xff] %vm226_vm1, %v224_v46  ;;  %v289_v54 = vsel %vm226_vm1, %v220_v45, 0.0  ;;  %v199_v55 = vadd.f32 %v348_v18, %v198_v49  ;;  %v215_v56 = vadd.f32 %v348_v18, %v214_v50 }
  0xf3   :  { %v200_v57 = vpop.f32.mrf.mxu0  ;;  %v216_v58 = vpop.f32.mrf.mxu1  ;;  %v290_v3 = vadd.f32 %v289_v54, %v288_v59  ;;  %v284_v5 = vmul.f32 %v370_v61, %v224_v46 }
  0xf4   :  { %v318_v63 = vsel %vm226_vm1, %v309_v52, 0.0  ;;  %v221_v0 = vmax.f32 %v199_v55, 0.0  ;;  %v225_v1 = vmax.f32 %v215_v56, 0.0 }
  0xf5   :  { %v319_v8 = vadd.f32 %v318_v63, %v317_v2  ;;  %v313_v18 = vmul.f32 %v284_v5, %v284_v5  ;;  %v297_v22 = vsel %vm226_vm1, %v284_v5, 0.0 }
  0xf6   :  { %230 = vst.msk [vmem:[%s551_s3 + $0x18] sm:$0xff] %vm226_vm1, %v221_v0  ;;  %v291_v6 = vsel %vm226_vm1, %v221_v0, 0.0  ;;  %v310_v7 = vmul.f32 %v221_v0, %v221_v0  ;;  %234 = vst.msk [vmem:[%s551_s3 + $0x38] sm:$0xff] %vm226_vm1, %v225_v1  ;;  %v285_v13 = vmul.f32 0.0, %v225_v1 }
  0xf7   :  { %v292_v9 = vadd.f32 %v291_v6, %v290_v3  ;;  %v326_v26 = vsel %vm226_vm1, %v313_v18, 0.0 }
  0xf8   :  { %v320_v12 = vsel %vm226_vm1, %v310_v7, 0.0  ;;  %v314_v23 = vmul.f32 %v285_v13, %v285_v13  ;;  %v299_v27 = vsel %vm226_vm1, %v285_v13, 0.0 }
  0xf9   :  { %v294_v14 = vadd.f32 %v293_v10, %v292_v9  ;;  %v321_v15 = vadd.f32 %v320_v12, %v319_v8 }
  0xfa   :  { %v328_v30 = vsel %vm226_vm1, %v314_v23, 0.0 }
  0xfb   :  { %v323_v19 = vadd.f32 %v322_v16, %v321_v15  ;;  %v296_v20 = vadd.f32 %v295_v17, %v294_v14 }
  0xfd   :  { %v298_v24 = vadd.f32 %v297_v22, %v296_v20  ;;  %v325_v25 = vadd.f32 %v324_v21, %v323_v19 }
  0xff   :  { %v300_v28 = vadd.f32 %v299_v27, %v298_v24  ;;  %v327_v29 = vadd.f32 %v326_v26, %v325_v25 }
 0x101   :  { %v301_v31 = vrot.slane %v300_v28, 4  ;;  %v329_v32 = vadd.f32 %v328_v30, %v327_v29 }
 0x103   :  { %v302_v33 = vadd.f32 %v301_v31, %v300_v28  ;;  %v330_v34 = vrot.slane %v329_v32, 4 }
 0x105   :  { %v303_v35 = vrot.slane %v302_v33, 2  ;;  %v331_v36 = vadd.f32 %v330_v34, %v329_v32 }
 0x107   :  { %v304_v37 = vadd.f32 %v303_v35, %v302_v33  ;;  %v332_v38 = vrot.slane %v331_v36, 2 }
 0x109   :  { %v305_v39 = vrot.slane %v304_v37, 1  ;;  %v333_v40 = vadd.f32 %v332_v38, %v331_v36 }
 0x10b   :  { %v334_v41 = vrot.slane %v333_v40, 1  ;;  %v306_v42 = vadd.f32 %v305_v39, %v304_v37 }
 0x10d   :  { %v335_v43 = vadd.f32 %v334_v41, %v333_v40 }
 0x10f   :  { %v337_v44 = vsel %vm336_vm3, %v306_v42, %v335_v43 }
 0x110   :  { %339 = vst.msk [vmem:[%s552_s4] sm:$0x3] %vm338_vm4, %v337_v44 }

// kernel: audio_classifier_forward.7
= control target key start
LH: loop header
LB: loop body
LE: loop exit
PB: predicated region body
PF: predicated region fallthrough
CT: control target
= control target key end

     0   :  { %s726_s24 = smov 0   ;;  %s728_s25 = smov 0   ;;  %s810_s0 = inlined_call_operand.vmem [shape: f32[2,32,64], index: 0, kind: input, shape index: {}]   ;;  %s811_s1 = inlined_call_operand.vmem [shape: f32[2,64], index: 1, kind: input, shape index: {}]   ;;  %s812_s2 = inlined_call_operand.vmem [shape: f32[2,64], index: 2, kind: input, shape index: {}]   ;;  %s813_s3 = inlined_call_operand.vmem [shape: bf16[64,32], index: 3, kind: input, shape index: {}]   ;;  %s814_s4 = inlined_call_operand.vmem [shape: f32[1,32], index: 4, kind: input, shape index: {}]   ;;  %s815_s5 = inlined_call_operand.vmem [shape: bf16[32,128], index: 5, kind: input, shape index: {}]   ;;  %s816_s6 = inlined_call_operand.vmem [shape: f32[1,128], index: 6, kind: input, shape index: {}]   ;;  %s817_s7 = inlined_call_operand.vmem [shape: f32[2,128], index: 7, kind: output, shape index: {}]  }
   0x1   :  { %s730_s26 = smov 0  }
   0x2 LB: > { %s739_s27 = sadd.s32 4294967295, %s681_s26   ;;  %s741_s28 = sadd.s32 1, %s681_s26   ;;  %s681_s26 = sphi %s730_s26, %s820_s26   ;;  %s677_s25 = sphi %s728_s25, %s819_s25   ;;  %s673_s24 = sphi %s726_s24, %s818_s24  }
   0x3   : > { %s21_s29 = ssub.s32 %s681_s26, %s741_s28  ;;  %s24_s30 = sadd.s32 1, %s677_s25 }
   0x4   : > { %p22_p0 = scmp.eq.s32.totalorder %s21_s29, 0  ;;  %p31_p1 = scmp.ne.s32.totalorder %s677_s25, %s673_s24 }
   0x5   : > { %p32_p2 = scmp.eq.s32.totalorder %s681_s26, 0  ;;  %p571_p4 = scmp.ge.s32.totalorder %s681_s26, 4 }
   0x6   : > { %s748_s8 = scalar_select %p22_p0, %s677_s25, %s24_s30  }
   0x7   : > { %p33_p3 = por %p32_p2, %p31_p1  ;;  %222 = sbr.rel (%p571_p4) target bundleno = 18 (0x12), region = 40 }
   0xc   : > { %225 = sbr.rel (!%p33_p3) target bundleno = 18 (0x12), region = 44  ;;  %s227_s9 = sand.u32 (%p33_p3), 1, %s677_s25  }
   0xd   : > { %s573_s10 = sshll.u32 (%p33_p3), %s681_s26, 3  ;;  %s572_s11 = sshll.u32 (%p33_p3), %s227_s9, 4 }
   0xe   : > { %s231_s14 = scalar_lea.vmem (%p33_p3), %s810_s0, %s573_s10  ;;  %s229_s15 = scalar_lea.vmem (%p33_p3), [#allocation3], %s572_s11 }
   0xf   : > { %v262_v0 = vld [vmem:[%s231_s14] sm:$0xff] (%p33_p3) }
  0x10   : > { %v264_v1 = vld [vmem:[%s231_s14 + $0x20] sm:$0xff] (%p33_p3)  ;;  %263 = vst [vmem:[%s229_s15] sm:$0xff] (%p33_p3), %v262_v0 }
  0x11   : > { %265 = vst [vmem:[%s229_s15 + $0x8] sm:$0xff] %v264_v1 }
  0x12 PF: > { %p574_p5 = scmp.ge.s32.totalorder %s681_s26, 1  ;;  %p270_p6 = scmp.lt.s32.totalorder %s681_s26, 5 }
  0x14   : > { %p271_p7 = pnand %p574_p5, %p270_p6 }
  0x15   : > { %s277_s16 = sand.u32 (!%p271_p7), 1, %s673_s24   ;;  %p576_p8 = scmp.ne.s32.totalorder (!%p271_p7), %s739_s27, 0 }
  0x16   : > { %274 = sbr.rel (%p271_p7) target bundleno = 529 (0x211), region = 82  ;;  %s575_s17 = sshll.u32 (!%p271_p7), %s277_s16, 4 }
  0x17   : > { %s279_s18 = scalar_lea.vmem (!%p271_p7), [#allocation3], %s575_s17 }
  0x1b   : > { %307 = sbr.rel (%p576_p8) target bundleno = 34 (0x22), region = 90 }
  0x20   : > { %vm308_vm0 = vcmask 517120   ;;  %v683_v2 = vmov -inf  }
  0x21   : > { %309 = vst.msk [vmem:[#allocation2] sm:$0x3] %vm308_vm0, %v683_v2 }
  0x22 PF: > { %v310_v3 = vld [vmem:[%s811_s1] sm:$0x1]  ;;  %v312_v4 = vld [vmem:[%s811_s1 + $0x1] sm:$0x1]  ;;  %v325_v10 = vlaneseq  ;;  %s577_s26 = sshll.u32 %s739_s27, 3  ;;  %v323_v18 = vld [vmem:[%s279_s18] sm:$0xff] }
  0x23   : > { %v311_v5 = vmul.f32 0.02, %v310_v3  ;;  %v313_v6 = vmul.f32 0.02, %v312_v4  ;;  %v316_v12 = vld [vmem:[%s812_s2] sm:$0x1]  ;;  %v340_v16 = vstv %s577_s26 }
  0x24   : > { %v326_v11 = vshrl.u32 %v325_v10, 7  ;;  %v320_v17 = vld [vmem:[%s812_s2 + $0x1] sm:$0x1]  ;;  %vm348_vm2 = vcmask 523264   ;;  %vm365_vm3 = vcmask 1041409   ;;  %vm369_vm4 = vcmask 517120  }
  0x25   : > { %v314_v7 = vmul.f32 %v311_v5, %v311_v5  ;;  %v324_v19 = vld [vmem:[%s279_s18 + $0x8] sm:$0xff]  ;;  %p578_p9 = scmp.ne.s32.totalorder %s739_s27, 3 }
  0x26   : > { %v327_v13 = vsub.s32 0, %v326_v11  ;;  %v341_v22 = vadd.s32 %v340_v16, %v326_v11 }
  0x27   : > { %v315_v8 = vsub.f32 %v313_v6, %v314_v7 }
  0x28   : > { %vm342_vm1 = vcmp.lt.s32.totalorder %v341_v22, 25  ;;  %v347_v43 = vld [vmem:[#allocation2] sm:$0x3] }
  0x29   : > { %v317_v9 = vadd.f32 1e-05, %v315_v8 }
  0x2b   : > { %647 = vrsqrt.f32 %v317_v9 }
  0x38   : > { %v648_v14 = vpop.eup %647 }
  0x39   : > { %v319_v15 = vmul.f32 %v648_v14, %v316_v12 }
  0x3b   : > { %v321_v20 = vmul.f32 %v319_v15, %v311_v5  ;;  %v328_v21 = vrot.slane %v319_v15, %v327_v13 }
  0x3d   : > { %v322_v23 = vsub.f32 %v320_v17, %v321_v20  ;;  %v329_v24 = vmul.f32 %v328_v21, %v323_v18  ;;  %v330_v25 = vmul.f32 %v328_v21, %v324_v19 }
  0x3f   : > { %v334_v26 = vrot.slane %v322_v23, %v327_v13 }
  0x41   : > { %v335_v27 = vadd.f32 %v334_v26, %v329_v24  ;;  %v336_v28 = vadd.f32 %v334_v26, %v330_v25 }
  0x43   : > { %v345_v29 = vsel %vm342_vm1, %v335_v27, -inf  ;;  %v346_v30 = vsel %vm342_vm1, %v336_v28, -inf }
  0x44   : > { %v349_v31 = vsel %vm348_vm2, %v345_v29, -inf  ;;  %v356_v32 = vsel %vm348_vm2, %v346_v30, -inf }
  0x45   : > { %v350_v33 = vrot.slane %v349_v31, 4  ;;  %v357_v34 = vrot.slane %v356_v32, 4 }
  0x47   : > { %v351_v35 = vmax.f32 %v349_v31, %v350_v33  ;;  %v358_v36 = vmax.f32 %v356_v32, %v357_v34 }
  0x49   : > { %v352_v37 = vrot.slane %v351_v35, 2  ;;  %v359_v38 = vrot.slane %v358_v36, 2 }
  0x4b   : > { %v353_v39 = vmax.f32 %v351_v35, %v352_v37  ;;  %v360_v40 = vmax.f32 %v358_v36, %v359_v38 }
  0x4d   : > { %v354_v41 = vrot.slane %v353_v39, 1  ;;  %v361_v42 = vrot.slane %v360_v40, 1 }
  0x4f   : > { %v355_v44 = vmax.f32 %v353_v39, %v354_v41  ;;  %v362_v45 = vmax.f32 %v360_v40, %v361_v42 }
  0x50   : > { %374 = sbr.rel (%p578_p9) target bundleno = 529 (0x211), region = 94 }
  0x51   : > { %v366_v46 = vsel %vm365_vm3, %v362_v45, %v355_v44 }
  0x52   : > { %v368_v47 = vmax.f32 %v347_v43, %v366_v46 }
  0x54   : > { %370 = vst.msk [vmem:[#allocation2] sm:$0x3] %vm369_vm4, %v368_v47 }
  0x55   : > { %v649_v48 = vld [vmem:[%s813_s3 + $0x18] sm:$0xff]   ;;  %v684_v49 = vmov 0.0   ;;  %v650_v50 = vld [vmem:[%s813_s3 + $0x10] sm:$0xff]   ;;  %vm685_vm5 = vmmov 0   ;;  %v651_v51 = vld [vmem:[%s813_s3 + $0x8] sm:$0xff]   ;;  %vm484_vm6 = vcmask 261120  }
  0x56   : > { %600 = vmatprep.subr.bf16.mxu0 %v684_v49  ;;  %612 = vmatprep.subr.bf16.mxu1 %v684_v49  ;;  %v652_v52 = vld [vmem:[%s813_s3] sm:$0xff]   ;;  %v653_v55 = vld [vmem:[%s815_s5 + $0x8] sm:$0xff]  }
  0x57   : > { %601 = vmatpush3.bf16.msra.mxu0 %v649_v48  ;;  %608 = vmatprep.mubr.msk.bf16.mxu0 %vm685_vm5, %v684_v49  ;;  %v654_v56 = vld [vmem:[%s815_s5] sm:$0xff]  }
  0x58   : > { %602 = vmatprep.subr.bf16.mxu0 %v684_v49  ;;  %616 = vmatprep.mubr.msk.bf16.mxu1 %vm685_vm5, %v684_v49  ;;  %v579_v57 = vld [vmem:[%s814_s4] ss:$0 sm:$0xff] }
  0x59   : > { %613 = vmatpush3.bf16.msra.mxu1 %v653_v55  ;;  %v585_v1 = vld [vmem:[%s816_s6] ss:$0 sm:$0xff] }
  0x5a   : > { %614 = vmatprep.subr.bf16.mxu1 %v684_v49 }
  0x5b   : > { %603 = vmatpush3.bf16.msra.mxu0 %v650_v50  ;;  %v375_v53 = vld [vmem:[#allocation2] sm:$0x3] }
  0x5c   : > { %604 = vmatprep.subr.bf16.mxu0 %v684_v49  ;;  %v376_v54 = vpack.c.bf16 %v375_v53, %v375_v53 }
  0x5d   : > { %615 = vmatpush3.bf16.msra.mxu1 %v654_v56 }
  0x5f   : > { %605 = vmatpush3.bf16.msra.mxu0 %v651_v51 }
  0x60   : > { %606 = vmatprep.subr.bf16.mxu0 %v684_v49 }
  0x63   : > { %607 = vmatpush3.bf16.msra.mxu0 %v652_v52 }
  0x66   : > { %609 = vmatmul.mubr.msk.bf16.vlgmr.msra.gmra.mxu0 %vm348_vm2, %v376_v54 }
 0x126   : > { %v453_v58 = vpop.f32.mrf.mxu0 }
 0x127   : > { %v454_v59 = vadd.f32 %v579_v57, %v453_v58 }
 0x128   : > { %v610_v60 = vpop.f32.mrf.mxu0 }
 0x129   : > { %v459_v61 = vmax.f32 %v454_v59, 0.0 }
 0x12a   : > { %v456_v62 = vpop.f32.mrf.mxu0 }
 0x12b   : > { %v460_v63 = vpack.c.bf16 %v459_v61, %v459_v61 }
 0x12c   : > { %v611_v0 = vpop.f32.mrf.mxu0 }
 0x12d   : > { %617 = vmatmul.mubr.msk.bf16.vlgmr.msra.gmra.mxu1 %vm484_vm6, %v460_v63 }
 0x1ed   : > { %v522_v2 = vpop.f32.mrf.mxu1 }
 0x1ee   : > { %v523_v3 = vadd.f32 %v585_v1, %v522_v2 }
 0x1ef   : > { %v618_v4 = vpop.f32.mrf.mxu1 }
 0x1f0   : > { %v589_v5 = vmul.f32 -1.442695, %v523_v3 }
 0x1f1   : > { %v525_v6 = vpop.f32.mrf.mxu1 }
 0x1f2   : > { %655 = vpow2.f32 %v589_v5 }
 0x1f3   : > { %v619_v7 = vpop.f32.mrf.mxu1 }
 0x1ff   : > { %v656_v8 = vpop.eup %655 }
 0x200   : > { %v531_v9 = vadd.f32 1.0, %v656_v8 }
 0x202   : > { %657 = vrcp.f32 %v531_v9 }
 0x20f   : > { %v658_v10 = vpop.eup %657 }
 0x210   : > { %534 = vst [vmem:[%s817_s7] sm:$0x3] %v658_v10 }
 0x211 PF: > { %p14_p10 = scmp.ge.s32.totalorder %s741_s28, 6   ;;  %s818_s24 = smov %s677_s25 }
 0x212   : > { %s819_s25 = smov %s748_s8  ;;  %s820_s26 = smov %s741_s28 }
 0x213   :  { %16 = sbr.rel (!%p14_p10) target bundleno = 2 (0x2), region = 125 }

</bundles_post_ra>
